<compile_context>
chip_gen: v6e
topology: v6e:2x2x1
jax: 0.10.0
libtpu: 0.0.40
codegen_flags: <defaults>
</compile_context>

<pallas_src>
import jax
import jax.numpy as jnp
from jax import lax
from jax.experimental import pallas as pl
from jax.experimental.pallas import tpu as pltpu

IN_LEN = 30       # in_length (fixed: fc1 expects 300 * 4 = 1200 features)
EMB_DIM = 30      # embedding_dim
VOCAB = 1000      # small vocab for the synthetic test
C1 = 100          # conv1 out channels
C2 = 300          # conv2 out channels
K = 3             # conv kernel size
L2 = IN_LEN // 3  # length after maxpool1 = 10
L3 = 4            # length after maxpool2
FC1_OUT = 200


def cnn_kernel(x_ref, w1_ref, b1_ref, w2a_ref, w2b_ref, w2c_ref, b2_ref,
               fw1_ref, fb1_ref, fw2_ref, fb2_ref, out_ref):
    TB = out_ref.shape[0]          # batch rows in this tile (multiple of 8)
    R2 = L2 * TB                   # conv2-stage rows (= 10 * TB)

    # ------- conv1: one batched matmul on the wrapper-built im2col ----------
    # x rows are ordered  j*(10*TB) + l2*TB + b   with sequence pos l1 = 3*l2+j
    y = jnp.dot(x_ref[...], w1_ref[...],
                preferred_element_type=jnp.float32)          # (30*TB, C1)

    # ------- maxpool1 (k=3, s=3): max of three contiguous (10*TB) slabs ------
    # bias-add and ReLU commute with the max, so do them once on the result.
    p1 = jnp.maximum(jnp.maximum(y[0:R2], y[R2:2 * R2]), y[2 * R2:3 * R2])
    p1 = jnp.maximum(p1 + b1_ref[...], 0.0)                  # (R2, C1)

    # ------- conv2 (k=3, pad=1): roll-based taps + accumulating matmuls ------
    # p1 rows are l2*TB + b; the l2±1 taps are ±TB-row rolls, with the wrapped
    # first/last TB rows (the zero-padding positions) masked to zero.
    row = lax.broadcasted_iota(jnp.int32, (R2, 1), 0)
    pm1 = jnp.where(row < TB, 0.0, pltpu.roll(p1, TB, axis=0))
    pp1 = jnp.where(row >= (L2 - 1) * TB, 0.0,
                    pltpu.roll(p1, (L2 - 1) * TB, axis=0))
    h2 = (jnp.dot(pm1, w2a_ref[...], preferred_element_type=jnp.float32)
          + jnp.dot(p1, w2b_ref[...], preferred_element_type=jnp.float32)
          + jnp.dot(pp1, w2c_ref[...], preferred_element_type=jnp.float32)
          + b2_ref[...])
    h2 = jnp.maximum(h2, 0.0)                                # (R2, C2)

    # ------- maxpool2 (k=3, s=3, pad=1): contiguous TB-row slab maxes --------
    def slab(l):
        return h2[l * TB:(l + 1) * TB]                       # (TB, C2)
    p2 = [jnp.maximum(slab(0), slab(1)),                     # window {-1,0,1}
          jnp.maximum(jnp.maximum(slab(2), slab(3)), slab(4)),
          jnp.maximum(jnp.maximum(slab(5), slab(6)), slab(7)),
          jnp.maximum(slab(8), slab(9))]                     # window {8,9,10}

    # ------- fc1 (+ReLU): four accumulating matmuls, no 1200-lane concat -----
    f1 = fb1_ref[...]
    for m in range(L3):
        f1 = f1 + jnp.dot(p2[m], fw1_ref[m],
                          preferred_element_type=jnp.float32)
    f1 = jnp.maximum(f1, 0.0)                                # (TB, FC1_OUT)

    # ------- fc2 (N=1): VPU multiply + lane reduction (skip the MXU pass) ----
    out_ref[...] = (jnp.sum(f1 * fw2_ref[...], axis=1, keepdims=True)
                    + fb2_ref[...])                          # (TB, 1)


def make_params(key):
    ks = jax.random.split(key, 9)
    emb = jax.random.normal(ks[0], (VOCAB, EMB_DIM), jnp.float32) * 0.1
    emb = emb.at[0].set(0.0)  # padding_idx = 0
    w1 = jax.random.normal(ks[1], (C1, EMB_DIM, K), jnp.float32) / (EMB_DIM * K) ** 0.5
    b1 = jax.random.normal(ks[2], (C1,), jnp.float32) * 0.01
    w2 = jax.random.normal(ks[3], (C2, C1, K), jnp.float32) / (C1 * K) ** 0.5
    b2 = jax.random.normal(ks[4], (C2,), jnp.float32) * 0.01
    fc1_w = jax.random.normal(ks[5], (FC1_OUT, C2 * L3), jnp.float32) / (C2 * L3) ** 0.5
    fc1_b = jax.random.normal(ks[6], (FC1_OUT,), jnp.float32) * 0.01
    fc2_w = jax.random.normal(ks[7], (1, FC1_OUT), jnp.float32) / FC1_OUT ** 0.5
    fc2_b = jax.random.normal(ks[8], (1,), jnp.float32) * 0.01
    return dict(emb=emb, w1=w1, b1=b1, w2=w2, b2=b2,
                fc1_w=fc1_w, fc1_b=fc1_b, fc2_w=fc2_w, fc2_b=fc2_b)


def forward_pallas(tokens, p, max_tb=128):
    B = tokens.shape[0]
    TB = min(((B + 7) // 8) * 8, max_tb)      # batch tile, multiple of 8, <= 128
    Bp = ((B + TB - 1) // TB) * TB
    G = Bp // TB                              # grid steps (>= 2 for large B -> v7x 2 TCs)
    if Bp != B:
        tokens = jnp.pad(tokens, ((0, Bp - B), (0, 0)))   # token 0 == padding_idx

    # ---- glue: embedding lookup + conv1 im2col (zero-padded taps) ----------
    emb = jnp.take(p["emb"], tokens, axis=0).astype(jnp.float32)      # (Bp, 30, 30)
    zcol = jnp.zeros((Bp, 1, EMB_DIM), jnp.float32)
    xm1 = jnp.concatenate([zcol, emb[:, :-1, :]], axis=1)             # x[l-1]
    xp1 = jnp.concatenate([emb[:, 1:, :], zcol], axis=1)              # x[l+1]
    im2 = jnp.concatenate([xm1, emb, xp1], axis=2)                    # (Bp, 30, 90)
    # Per-tile row order j-major / l2 / batch so both pools are slab maxes.
    im2 = im2.reshape(G, TB, L2, K, K * EMB_DIM)                      # l1 = 3*l2 + j
    im2 = jnp.transpose(im2, (0, 3, 2, 1, 4))                         # (G, j, l2, b, feat)
    x2d = im2.reshape(G * K * L2 * TB, K * EMB_DIM)                   # (G*30*TB, 90)

    # ---- glue: kernel-layout parameters ------------------------------------
    w1k = jnp.transpose(p["w1"], (2, 1, 0)).reshape(K * EMB_DIM, C1)  # (90, 100)
    b1 = p["b1"].reshape(1, C1)
    w2a = p["w2"][:, :, 0].T                                          # (100, 300) tap l2-1
    w2b = p["w2"][:, :, 1].T                                          # tap l2
    w2c = p["w2"][:, :, 2].T                                          # tap l2+1
    b2 = p["b2"].reshape(1, C2)
    fw1 = jnp.transpose(p["fc1_w"].reshape(FC1_OUT, C2, L3), (2, 1, 0))  # (4, 300, 200)
    fb1 = p["fc1_b"].reshape(1, FC1_OUT)
    fw2 = p["fc2_w"].reshape(1, FC1_OUT)                              # (1, 200)
    fb2 = p["fc2_b"].reshape(1, 1)

    def const_spec(arr):                      # full-array block, fixed index
        zeros = (0,) * arr.ndim
        return pl.BlockSpec(arr.shape, lambda i, _z=zeros: _z)

    grid_spec = pltpu.PrefetchScalarGridSpec(
        num_scalar_prefetch=0,
        grid=(G,),
        in_specs=[
            pl.BlockSpec((K * L2 * TB, K * EMB_DIM), lambda i: (i, 0)),  # im2col rows
            const_spec(w1k), const_spec(b1),
            const_spec(w2a), const_spec(w2b), const_spec(w2c), const_spec(b2),
            const_spec(fw1), const_spec(fb1), const_spec(fw2), const_spec(fb2),
        ],
        out_specs=pl.BlockSpec((TB, 1), lambda i: (i, 0)),
    )
    out = pl.pallas_call(
        cnn_kernel,
        out_shape=jax.ShapeDtypeStruct((Bp, 1), jnp.float32),
        grid_spec=grid_spec,
        compiler_params=pltpu.CompilerParams(
            dimension_semantics=("parallel",),
            vmem_limit_bytes=40 * 1024 * 1024),
    )(x2d, w1k, b1, w2a, w2b, w2c, b2, fw1, fb1, fw2, fb2)
    return out.reshape(Bp)[:B]


def forward_reference(tokens, p):
    # pure-JAX reference mirroring the PyTorch forward (NCL layout), full f32.
    hi = lax.Precision.HIGHEST
    emb = jnp.take(p["emb"], tokens, axis=0)                     # (B, L, E)
    x = jnp.transpose(emb, (0, 2, 1))                            # (B, E, L)

    def conv1d(x, w, b, pad):
        out = lax.conv_general_dilated(
            x, w, window_strides=(1,), padding=[(pad, pad)],
            dimension_numbers=("NCH", "OIH", "NCH"), precision=hi)
        return out + b[None, :, None]

    h = jax.nn.relu(conv1d(x, p["w1"], p["b1"], 1))              # (B, 100, 30)
    h = jnp.max(h.reshape(h.shape[0], h.shape[1], L2, 3), axis=-1)
    h = jax.nn.relu(conv1d(h, p["w2"], p["b2"], 1))              # (B, 300, 10)
    hp = jnp.pad(h, ((0, 0), (0, 0), (1, 1)), constant_values=-jnp.inf)
    h = jnp.max(hp.reshape(hp.shape[0], hp.shape[1], L3, 3), axis=-1)   # (B, 300, 4)
    flat = h.reshape(h.shape[0], -1)                             # (B, 1200), (C, L) order
    f = jax.nn.relu(jnp.dot(flat, p["fc1_w"].T, precision=hi) + p["fc1_b"])
    o = jnp.dot(f, p["fc2_w"].T, precision=hi) + p["fc2_b"]
    return o.reshape(-1)


if __name__ == "__main__":
    key = jax.random.PRNGKey(0)
    k_tok, k_tok2, k_par = jax.random.split(key, 3)
    params = make_params(k_par)

    # Small batch (single grid step).
    B = 4
    tokens = jax.random.randint(k_tok, (B, IN_LEN), 1, VOCAB, dtype=jnp.int32)
    out = jax.block_until_ready(jax.jit(forward_pallas)(tokens, params))
    assert out.shape == (B,)
    ref = jax.block_until_ready(forward_reference(tokens, params))
    assert jnp.allclose(out, ref, rtol=2e-3, atol=2e-3), (out, ref)

    # Multi-tile path (G=3 grid steps, padded batch) with a small tile.
    B2 = 20
    tokens2 = jax.random.randint(k_tok2, (B2, IN_LEN), 1, VOCAB, dtype=jnp.int32)
    out2 = jax.block_until_ready(
        jax.jit(lambda t, pp: forward_pallas(t, pp, max_tb=8))(tokens2, params))
    ref2 = jax.block_until_ready(forward_reference(tokens2, params))
    assert out2.shape == (B2,)
    assert jnp.allclose(out2, ref2, rtol=2e-3, atol=2e-3), (out2, ref2)

    print("KERNEL_OK")
</pallas_src>

<mosaic_0001>
module attributes {stable_mosaic.version = 11 : i64} {
  func.func @cnn_kernel(%arg0: i32, %arg1: memref<240x90xf32, #tpu.memory_space<vmem>>, %arg2: memref<90x100xf32, #tpu.memory_space<vmem>>, %arg3: memref<1x100xf32, #tpu.memory_space<vmem>>, %arg4: memref<100x300xf32, #tpu.memory_space<vmem>>, %arg5: memref<100x300xf32, #tpu.memory_space<vmem>>, %arg6: memref<100x300xf32, #tpu.memory_space<vmem>>, %arg7: memref<1x300xf32, #tpu.memory_space<vmem>>, %arg8: memref<4x300x200xf32, #tpu.memory_space<vmem>>, %arg9: memref<1x200xf32, #tpu.memory_space<vmem>>, %arg10: memref<1x200xf32, #tpu.memory_space<vmem>>, %arg11: memref<1x1xf32, #tpu.memory_space<vmem>>, %arg12: memref<8x1xf32, #tpu.memory_space<vmem>>) attributes {dimension_semantics = [#tpu.dimension_semantics<parallel>], iteration_bounds = array<i64: 1>, scalar_prefetch = 0 : i64, scratch_operands = 0 : i64, tpu.core_type = #tpu.core_type<tc>, window_params = [{transform_indices = @transform_0, window_bounds = array<i64: 240, 90>}, {pipeline_mode = #tpu.pipeline_mode<synchronous>, transform_indices = @transform_1, window_bounds = array<i64: 90, 100>}, {pipeline_mode = #tpu.pipeline_mode<synchronous>, transform_indices = @transform_2, window_bounds = array<i64: 1, 100>}, {pipeline_mode = #tpu.pipeline_mode<synchronous>, transform_indices = @transform_3, window_bounds = array<i64: 100, 300>}, {pipeline_mode = #tpu.pipeline_mode<synchronous>, transform_indices = @transform_4, window_bounds = array<i64: 100, 300>}, {pipeline_mode = #tpu.pipeline_mode<synchronous>, transform_indices = @transform_5, window_bounds = array<i64: 100, 300>}, {pipeline_mode = #tpu.pipeline_mode<synchronous>, transform_indices = @transform_6, window_bounds = array<i64: 1, 300>}, {pipeline_mode = #tpu.pipeline_mode<synchronous>, transform_indices = @transform_7, window_bounds = array<i64: 4, 300, 200>}, {pipeline_mode = #tpu.pipeline_mode<synchronous>, transform_indices = @transform_8, window_bounds = array<i64: 1, 200>}, {pipeline_mode = #tpu.pipeline_mode<synchronous>, transform_indices = @transform_9, window_bounds = array<i64: 1, 200>}, {pipeline_mode = #tpu.pipeline_mode<synchronous>, transform_indices = @transform_10, window_bounds = array<i64: 1, 1>}, {transform_indices = @transform_11, window_bounds = array<i64: 8, 1>}]} {
    %c0 = arith.constant 0 : index
    %c0_0 = arith.constant 0 : index
    %0 = vector.load %arg1[%c0, %c0_0] : memref<240x90xf32, #tpu.memory_space<vmem>>, vector<240x90xf32>
    %c0_1 = arith.constant 0 : index
    %c0_2 = arith.constant 0 : index
    %1 = vector.load %arg2[%c0_1, %c0_2] : memref<90x100xf32, #tpu.memory_space<vmem>>, vector<90x100xf32>
    %cst = arith.constant dense<0.000000e+00> : vector<240x100xf32>
    %2 = tpu.matmul %0, %1, %cst {dimension_numbers = #tpu.dot_dimension_numbers<[1], [0], [0], [1], [0, 0, 1, 1], [], []>} : vector<240x90xf32>, vector<90x100xf32>, vector<240x100xf32> -> vector<240x100xf32>
    %3 = vector.extract_strided_slice %2 {offsets = [0, 0], sizes = [80, 100], strides = [1, 1]} : vector<240x100xf32> to vector<80x100xf32>
    %4 = vector.extract_strided_slice %2 {offsets = [80, 0], sizes = [80, 100], strides = [1, 1]} : vector<240x100xf32> to vector<80x100xf32>
    %5 = arith.maximumf %3, %4 : vector<80x100xf32>
    %6 = vector.extract_strided_slice %2 {offsets = [160, 0], sizes = [80, 100], strides = [1, 1]} : vector<240x100xf32> to vector<80x100xf32>
    %7 = arith.maximumf %5, %6 : vector<80x100xf32>
    %c0_3 = arith.constant 0 : index
    %c0_4 = arith.constant 0 : index
    %8 = vector.load %arg3[%c0_3, %c0_4] : memref<1x100xf32, #tpu.memory_space<vmem>>, vector<1x100xf32>
    %9 = vector.broadcast %8 : vector<1x100xf32> to vector<80x100xf32>
    %10 = arith.addf %7, %9 : vector<80x100xf32>
    %cst_5 = arith.constant 0.000000e+00 : f32
    %11 = vector.broadcast %cst_5 : f32 to vector<80x100xf32>
    %12 = arith.maximumf %10, %11 : vector<80x100xf32>
    %13 = tpu.iota {dimensions = array<i32: 0>} : vector<80x1xi32>
    %c8_i32 = arith.constant 8 : i32
    %14 = vector.broadcast %c8_i32 : i32 to vector<80x1xi32>
    %15 = arith.cmpi slt, %13, %14 : vector<80x1xi32>
    %c8_i32_6 = arith.constant 8 : i32
    %16 = tpu.dynamic_rotate %12 by %c8_i32_6 dim 0 : vector<80x100xf32>, i32 -> vector<80x100xf32>
    %cst_7 = arith.constant 0.000000e+00 : f32
    %17 = vector.shape_cast %15 : vector<80x1xi1> to vector<80x1xi1>
    %18 = vector.broadcast %17 : vector<80x1xi1> to vector<80x100xi1>
    %19 = vector.broadcast %cst_7 : f32 to vector<80x100xf32>
    %20 = arith.select %18, %19, %16 : vector<80x100xi1>, vector<80x100xf32>
    %c72_i32 = arith.constant 72 : i32
    %21 = vector.broadcast %c72_i32 : i32 to vector<80x1xi32>
    %22 = arith.cmpi sge, %13, %21 : vector<80x1xi32>
    %c72_i32_8 = arith.constant 72 : i32
    %23 = tpu.dynamic_rotate %12 by %c72_i32_8 dim 0 : vector<80x100xf32>, i32 -> vector<80x100xf32>
    %cst_9 = arith.constant 0.000000e+00 : f32
    %24 = vector.shape_cast %22 : vector<80x1xi1> to vector<80x1xi1>
    %25 = vector.broadcast %24 : vector<80x1xi1> to vector<80x100xi1>
    %26 = vector.broadcast %cst_9 : f32 to vector<80x100xf32>
    %27 = arith.select %25, %26, %23 : vector<80x100xi1>, vector<80x100xf32>
    %c0_10 = arith.constant 0 : index
    %c0_11 = arith.constant 0 : index
    %28 = vector.load %arg4[%c0_10, %c0_11] : memref<100x300xf32, #tpu.memory_space<vmem>>, vector<100x300xf32>
    %cst_12 = arith.constant dense<0.000000e+00> : vector<80x300xf32>
    %29 = tpu.matmul %20, %28, %cst_12 {dimension_numbers = #tpu.dot_dimension_numbers<[1], [0], [0], [1], [0, 0, 1, 1], [], []>} : vector<80x100xf32>, vector<100x300xf32>, vector<80x300xf32> -> vector<80x300xf32>
    %c0_13 = arith.constant 0 : index
    %c0_14 = arith.constant 0 : index
    %30 = vector.load %arg5[%c0_13, %c0_14] : memref<100x300xf32, #tpu.memory_space<vmem>>, vector<100x300xf32>
    %cst_15 = arith.constant dense<0.000000e+00> : vector<80x300xf32>
    %31 = tpu.matmul %12, %30, %cst_15 {dimension_numbers = #tpu.dot_dimension_numbers<[1], [0], [0], [1], [0, 0, 1, 1], [], []>} : vector<80x100xf32>, vector<100x300xf32>, vector<80x300xf32> -> vector<80x300xf32>
    %32 = arith.addf %29, %31 : vector<80x300xf32>
    %c0_16 = arith.constant 0 : index
    %c0_17 = arith.constant 0 : index
    %33 = vector.load %arg6[%c0_16, %c0_17] : memref<100x300xf32, #tpu.memory_space<vmem>>, vector<100x300xf32>
    %cst_18 = arith.constant dense<0.000000e+00> : vector<80x300xf32>
    %34 = tpu.matmul %27, %33, %cst_18 {dimension_numbers = #tpu.dot_dimension_numbers<[1], [0], [0], [1], [0, 0, 1, 1], [], []>} : vector<80x100xf32>, vector<100x300xf32>, vector<80x300xf32> -> vector<80x300xf32>
    %35 = arith.addf %32, %34 : vector<80x300xf32>
    %c0_19 = arith.constant 0 : index
    %c0_20 = arith.constant 0 : index
    %36 = vector.load %arg7[%c0_19, %c0_20] : memref<1x300xf32, #tpu.memory_space<vmem>>, vector<1x300xf32>
    %37 = vector.broadcast %36 : vector<1x300xf32> to vector<80x300xf32>
    %38 = arith.addf %35, %37 : vector<80x300xf32>
    %cst_21 = arith.constant 0.000000e+00 : f32
    %39 = vector.broadcast %cst_21 : f32 to vector<80x300xf32>
    %40 = arith.maximumf %38, %39 : vector<80x300xf32>
    %41 = vector.extract_strided_slice %40 {offsets = [0, 0], sizes = [8, 300], strides = [1, 1]} : vector<80x300xf32> to vector<8x300xf32>
    %42 = vector.extract_strided_slice %40 {offsets = [8, 0], sizes = [8, 300], strides = [1, 1]} : vector<80x300xf32> to vector<8x300xf32>
    %43 = arith.maximumf %41, %42 : vector<8x300xf32>
    %44 = vector.extract_strided_slice %40 {offsets = [16, 0], sizes = [8, 300], strides = [1, 1]} : vector<80x300xf32> to vector<8x300xf32>
    %45 = vector.extract_strided_slice %40 {offsets = [24, 0], sizes = [8, 300], strides = [1, 1]} : vector<80x300xf32> to vector<8x300xf32>
    %46 = arith.maximumf %44, %45 : vector<8x300xf32>
    %47 = vector.extract_strided_slice %40 {offsets = [32, 0], sizes = [8, 300], strides = [1, 1]} : vector<80x300xf32> to vector<8x300xf32>
    %48 = arith.maximumf %46, %47 : vector<8x300xf32>
    %49 = vector.extract_strided_slice %40 {offsets = [40, 0], sizes = [8, 300], strides = [1, 1]} : vector<80x300xf32> to vector<8x300xf32>
    %50 = vector.extract_strided_slice %40 {offsets = [48, 0], sizes = [8, 300], strides = [1, 1]} : vector<80x300xf32> to vector<8x300xf32>
    %51 = arith.maximumf %49, %50 : vector<8x300xf32>
    %52 = vector.extract_strided_slice %40 {offsets = [56, 0], sizes = [8, 300], strides = [1, 1]} : vector<80x300xf32> to vector<8x300xf32>
    %53 = arith.maximumf %51, %52 : vector<8x300xf32>
    %54 = vector.extract_strided_slice %40 {offsets = [64, 0], sizes = [8, 300], strides = [1, 1]} : vector<80x300xf32> to vector<8x300xf32>
    %55 = vector.extract_strided_slice %40 {offsets = [72, 0], sizes = [8, 300], strides = [1, 1]} : vector<80x300xf32> to vector<8x300xf32>
    %56 = arith.maximumf %54, %55 : vector<8x300xf32>
    %c0_22 = arith.constant 0 : index
    %c0_23 = arith.constant 0 : index
    %57 = vector.load %arg9[%c0_22, %c0_23] : memref<1x200xf32, #tpu.memory_space<vmem>>, vector<1x200xf32>
    %c0_24 = arith.constant 0 : index
    %c0_25 = arith.constant 0 : index
    %c0_26 = arith.constant 0 : index
    %58 = vector.load %arg8[%c0_24, %c0_25, %c0_26] : memref<4x300x200xf32, #tpu.memory_space<vmem>>, vector<1x300x200xf32>
    %59 = vector.shape_cast %58 : vector<1x300x200xf32> to vector<300x200xf32>
    %cst_27 = arith.constant dense<0.000000e+00> : vector<8x200xf32>
    %60 = tpu.matmul %43, %59, %cst_27 {dimension_numbers = #tpu.dot_dimension_numbers<[1], [0], [0], [1], [0, 0, 1, 1], [], []>} : vector<8x300xf32>, vector<300x200xf32>, vector<8x200xf32> -> vector<8x200xf32>
    %61 = vector.broadcast %57 : vector<1x200xf32> to vector<8x200xf32>
    %62 = arith.addf %61, %60 : vector<8x200xf32>
    %c1 = arith.constant 1 : index
    %c0_28 = arith.constant 0 : index
    %c0_29 = arith.constant 0 : index
    %63 = vector.load %arg8[%c1, %c0_28, %c0_29] : memref<4x300x200xf32, #tpu.memory_space<vmem>>, vector<1x300x200xf32>
    %64 = vector.shape_cast %63 : vector<1x300x200xf32> to vector<300x200xf32>
    %cst_30 = arith.constant dense<0.000000e+00> : vector<8x200xf32>
    %65 = tpu.matmul %48, %64, %cst_30 {dimension_numbers = #tpu.dot_dimension_numbers<[1], [0], [0], [1], [0, 0, 1, 1], [], []>} : vector<8x300xf32>, vector<300x200xf32>, vector<8x200xf32> -> vector<8x200xf32>
    %66 = arith.addf %62, %65 : vector<8x200xf32>
    %c2 = arith.constant 2 : index
    %c0_31 = arith.constant 0 : index
    %c0_32 = arith.constant 0 : index
    %67 = vector.load %arg8[%c2, %c0_31, %c0_32] : memref<4x300x200xf32, #tpu.memory_space<vmem>>, vector<1x300x200xf32>
    %68 = vector.shape_cast %67 : vector<1x300x200xf32> to vector<300x200xf32>
    %cst_33 = arith.constant dense<0.000000e+00> : vector<8x200xf32>
    %69 = tpu.matmul %53, %68, %cst_33 {dimension_numbers = #tpu.dot_dimension_numbers<[1], [0], [0], [1], [0, 0, 1, 1], [], []>} : vector<8x300xf32>, vector<300x200xf32>, vector<8x200xf32> -> vector<8x200xf32>
    %70 = arith.addf %66, %69 : vector<8x200xf32>
    %c3 = arith.constant 3 : index
    %c0_34 = arith.constant 0 : index
    %c0_35 = arith.constant 0 : index
    %71 = vector.load %arg8[%c3, %c0_34, %c0_35] : memref<4x300x200xf32, #tpu.memory_space<vmem>>, vector<1x300x200xf32>
    %72 = vector.shape_cast %71 : vector<1x300x200xf32> to vector<300x200xf32>
    %cst_36 = arith.constant dense<0.000000e+00> : vector<8x200xf32>
    %73 = tpu.matmul %56, %72, %cst_36 {dimension_numbers = #tpu.dot_dimension_numbers<[1], [0], [0], [1], [0, 0, 1, 1], [], []>} : vector<8x300xf32>, vector<300x200xf32>, vector<8x200xf32> -> vector<8x200xf32>
    %74 = arith.addf %70, %73 : vector<8x200xf32>
    %cst_37 = arith.constant 0.000000e+00 : f32
    %75 = vector.broadcast %cst_37 : f32 to vector<8x200xf32>
    %76 = arith.maximumf %74, %75 : vector<8x200xf32>
    %c0_38 = arith.constant 0 : index
    %c0_39 = arith.constant 0 : index
    %77 = vector.load %arg10[%c0_38, %c0_39] : memref<1x200xf32, #tpu.memory_space<vmem>>, vector<1x200xf32>
    %78 = vector.broadcast %77 : vector<1x200xf32> to vector<8x200xf32>
    %79 = arith.mulf %76, %78 : vector<8x200xf32>
    %cst_40 = arith.constant dense<0.000000e+00> : vector<8xf32>
    %80 = vector.multi_reduction <add>, %79, %cst_40 [1] : vector<8x200xf32> to vector<8xf32>
    %81 = vector.shape_cast %80 : vector<8xf32> to vector<8x1xf32>
    %c0_41 = arith.constant 0 : index
    %c0_42 = arith.constant 0 : index
    %82 = vector.load %arg11[%c0_41, %c0_42] : memref<1x1xf32, #tpu.memory_space<vmem>>, vector<1x1xf32>
    %83 = vector.broadcast %82 : vector<1x1xf32> to vector<8x1xf32>
    %84 = arith.addf %81, %83 : vector<8x1xf32>
    %c0_43 = arith.constant 0 : index
    %c0_44 = arith.constant 0 : index
    %85 = vector.load %arg12[%c0_43, %c0_44] : memref<8x1xf32, #tpu.memory_space<vmem>>, vector<8x1xf32>
    tpu.vector_store %arg12[%c0_43, %c0_44], %84 {strides = array<i32>} : memref<8x1xf32, #tpu.memory_space<vmem>>, vector<8x1xf32>,
    return
  }
  func.func @transform_0(%arg0: i32) -> (i32, i32) {
    %c0_i32 = arith.constant 0 : i32
    %c0_i32_0 = arith.constant 0 : i32
    return %arg0, %c0_i32 : i32, i32
  }
  func.func @transform_1(%arg0: i32) -> (i32, i32) {
    %c0_i32 = arith.constant 0 : i32
    %c0_i32_0 = arith.constant 0 : i32
    %c0_i32_1 = arith.constant 0 : i32
    return %c0_i32, %c0_i32_0 : i32, i32
  }
  func.func @transform_2(%arg0: i32) -> (i32, i32) {
    %c0_i32 = arith.constant 0 : i32
    %c0_i32_0 = arith.constant 0 : i32
    %c0_i32_1 = arith.constant 0 : i32
    return %c0_i32, %c0_i32_0 : i32, i32
  }
  func.func @transform_3(%arg0: i32) -> (i32, i32) {
    %c0_i32 = arith.constant 0 : i32
    %c0_i32_0 = arith.constant 0 : i32
    %c0_i32_1 = arith.constant 0 : i32
    return %c0_i32, %c0_i32_0 : i32, i32
  }
  func.func @transform_4(%arg0: i32) -> (i32, i32) {
    %c0_i32 = arith.constant 0 : i32
    %c0_i32_0 = arith.constant 0 : i32
    %c0_i32_1 = arith.constant 0 : i32
    return %c0_i32, %c0_i32_0 : i32, i32
  }
  func.func @transform_5(%arg0: i32) -> (i32, i32) {
    %c0_i32 = arith.constant 0 : i32
    %c0_i32_0 = arith.constant 0 : i32
    %c0_i32_1 = arith.constant 0 : i32
    return %c0_i32, %c0_i32_0 : i32, i32
  }
  func.func @transform_6(%arg0: i32) -> (i32, i32) {
    %c0_i32 = arith.constant 0 : i32
    %c0_i32_0 = arith.constant 0 : i32
    %c0_i32_1 = arith.constant 0 : i32
    return %c0_i32, %c0_i32_0 : i32, i32
  }
  func.func @transform_7(%arg0: i32) -> (i32, i32, i32) {
    %c0_i32 = arith.constant 0 : i32
    %c0_i32_0 = arith.constant 0 : i32
    %c0_i32_1 = arith.constant 0 : i32
    %c0_i32_2 = arith.constant 0 : i32
    return %c0_i32, %c0_i32_0, %c0_i32_1 : i32, i32, i32
  }
  func.func @transform_8(%arg0: i32) -> (i32, i32) {
    %c0_i32 = arith.constant 0 : i32
    %c0_i32_0 = arith.constant 0 : i32
    %c0_i32_1 = arith.constant 0 : i32
    return %c0_i32, %c0_i32_0 : i32, i32
  }
  func.func @transform_9(%arg0: i32) -> (i32, i32) {
    %c0_i32 = arith.constant 0 : i32
    %c0_i32_0 = arith.constant 0 : i32
    %c0_i32_1 = arith.constant 0 : i32
    return %c0_i32, %c0_i32_0 : i32, i32
  }
  func.func @transform_10(%arg0: i32) -> (i32, i32) {
    %c0_i32 = arith.constant 0 : i32
    %c0_i32_0 = arith.constant 0 : i32
    %c0_i32_1 = arith.constant 0 : i32
    return %c0_i32, %c0_i32_0 : i32, i32
  }
  func.func @transform_11(%arg0: i32) -> (i32, i32) {
    %c0_i32 = arith.constant 0 : i32
    %c0_i32_0 = arith.constant 0 : i32
    return %arg0, %c0_i32 : i32, i32
  }
}

</mosaic_0001>

<bundles_post_ra>
// kernel: forward_pallas.1
= control target key start
LH: loop header
LB: loop body
LE: loop exit
PB: predicated region body
PF: predicated region fallthrough
CT: control target
= control target key end

     0   :  { %vm173_vm0 = vcmask 1041408   ;;  %vm82_vm1 = vcmask 736256   ;;  %vm639_vm2 = vcmask 1043456   ;;  %vm608_vm3 = vcmask 818176   ;;  %s5163_s1 = inlined_call_operand.vmem [shape: f32[90,100], index: 1, kind: input, shape index: {}]   ;;  %s5164_s0 = inlined_call_operand.vmem [shape: f32[240,90], index: 0, kind: input, shape index: {}]   ;;  %s5165_s3 = inlined_call_operand.vmem [shape: f32[100,300], index: 3, kind: input, shape index: {}]   ;;  %s5166_s4 = inlined_call_operand.vmem [shape: f32[100,300], index: 4, kind: input, shape index: {}]   ;;  %s5167_s5 = inlined_call_operand.vmem [shape: f32[100,300], index: 5, kind: input, shape index: {}]   ;;  %s5168_s2 = inlined_call_operand.vmem [shape: f32[1,100], index: 2, kind: input, shape index: {}]   ;;  %s5169_s7 = inlined_call_operand.vmem [shape: f32[4,300,200], index: 7, kind: input, shape index: {}]   ;;  %s5170_s6 = inlined_call_operand.vmem [shape: f32[1,300], index: 6, kind: input, shape index: {}]   ;;  %s5171_s10 = inlined_call_operand.<no memory space> [shape: f32[1,1], index: 10, kind: input, shape index: {}]   ;;  %s5172_s8 = inlined_call_operand.vmem [shape: f32[1,200], index: 8, kind: input, shape index: {}]   ;;  %s5173_s9 = inlined_call_operand.vmem [shape: f32[1,200], index: 9, kind: input, shape index: {}]   ;;  %s5174_s11 = inlined_call_operand.vmem [shape: f32[8,1], index: 11, kind: output, shape index: {}]  }
   0x1   :  { %v81_v0 = vld [vmem:[%s5163_s1 + $0x58] sm:$0x3]  ;;  %v80_v1 = vld [vmem:[%s5163_s1 + $0x50] sm:$0xff]  ;;  %v79_v2 = vld [vmem:[%s5163_s1 + $0x48] sm:$0xff]  ;;  %vm1688_vm4 = vcmask 359424   ;;  %vm2559_vm5 = vcmask 588800  }
   0x2   :  { %3027 = vmatprep.subr.msk.mxu0 %vm173_vm0, %v81_v0  ;;  %v78_v3 = vld [vmem:[%s5163_s1 + $0x40] sm:$0xff]  ;;  %v77_v5 = vld [vmem:[%s5163_s1 + $0x38] sm:$0xff]  ;;  %v76_v6 = vld [vmem:[%s5163_s1 + $0x30] sm:$0xff]  ;;  %vm2572_vm6 = vcmask 7168  }
   0x3   :  { %3028 = vmatpush3.msk.msra.mxu0 %vm173_vm0, %v81_v0  ;;  %v40_v4 = vld [vmem:[%s5164_s0] sm:$0xff]  ;;  %v75_v7 = vld [vmem:[%s5163_s1 + $0x28] sm:$0xff]  ;;  %v73_v9 = vld [vmem:[%s5163_s1 + $0x18] sm:$0xff] }
   0x4   :  { %3029 = vmatprep.subr.mxu0 %v80_v1  ;;  %3051 = vmatprep.mubr.msk.f32.mxu0 %vm82_vm1, %v40_v4  ;;  %v74_v8 = vld [vmem:[%s5163_s1 + $0x20] sm:$0xff]  ;;  %v72_v10 = vld [vmem:[%s5163_s1 + $0x10] sm:$0xff]  ;;  %v71_v11 = vld [vmem:[%s5163_s1 + $0x8] sm:$0xff] }
   0x5   :  { %3030 = vmatpush3.msra.mxu0 %v80_v1  ;;  %v70_v12 = vld [vmem:[%s5163_s1] sm:$0xff]  ;;  %v41_v13 = vld [vmem:[%s5164_s0 + $0x8] sm:$0xff]  ;;  %v42_v14 = vld [vmem:[%s5164_s0 + $0x10] sm:$0xff] }
   0x6   :  { %3031 = vmatprep.subr.mxu0 %v79_v2  ;;  %v43_v15 = vld [vmem:[%s5164_s0 + $0x18] sm:$0xff]  ;;  %v44_v16 = vld [vmem:[%s5164_s0 + $0x20] sm:$0xff]  ;;  %v45_v17 = vld [vmem:[%s5164_s0 + $0x28] sm:$0xff] }
   0x7   :  { %3032 = vmatpush3.msra.mxu0 %v79_v2  ;;  %v46_v18 = vld [vmem:[%s5164_s0 + $0x30] sm:$0xff]  ;;  %v47_v19 = vld [vmem:[%s5164_s0 + $0x38] sm:$0xff]  ;;  %v48_v20 = vld [vmem:[%s5164_s0 + $0x40] sm:$0xff] }
   0x8   :  { %3033 = vmatprep.subr.mxu0 %v78_v3  ;;  %v49_v21 = vld [vmem:[%s5164_s0 + $0x48] sm:$0xff]  ;;  %v50_v22 = vld [vmem:[%s5164_s0 + $0x50] sm:$0xff]  ;;  %v51_v23 = vld [vmem:[%s5164_s0 + $0x58] sm:$0xff] }
   0x9   :  { %3034 = vmatpush3.msra.mxu0 %v78_v3  ;;  %v52_v24 = vld [vmem:[%s5164_s0 + $0x60] sm:$0xff]  ;;  %v53_v25 = vld [vmem:[%s5164_s0 + $0x68] sm:$0xff]  ;;  %v54_v26 = vld [vmem:[%s5164_s0 + $0x70] sm:$0xff] }
   0xa   :  { %3035 = vmatprep.subr.mxu0 %v77_v5  ;;  %v55_v27 = vld [vmem:[%s5164_s0 + $0x78] sm:$0xff]  ;;  %v56_v28 = vld [vmem:[%s5164_s0 + $0x80] sm:$0xff]  ;;  %v57_v29 = vld [vmem:[%s5164_s0 + $0x88] sm:$0xff] }
   0xb   :  { %3036 = vmatpush3.msra.mxu0 %v77_v5  ;;  %v58_v30 = vld [vmem:[%s5164_s0 + $0x90] sm:$0xff]  ;;  %v59_v31 = vld [vmem:[%s5164_s0 + $0x98] sm:$0xff]  ;;  %v60_v32 = vld [vmem:[%s5164_s0 + $0xa0] sm:$0xff] }
   0xc   :  { %3037 = vmatprep.subr.mxu0 %v76_v6  ;;  %v61_v33 = vld [vmem:[%s5164_s0 + $0xa8] sm:$0xff]  ;;  %v62_v34 = vld [vmem:[%s5164_s0 + $0xb0] sm:$0xff]  ;;  %v63_v35 = vld [vmem:[%s5164_s0 + $0xb8] sm:$0xff] }
   0xd   :  { %3038 = vmatpush3.msra.mxu0 %v76_v6  ;;  %v64_v36 = vld [vmem:[%s5164_s0 + $0xc0] sm:$0xff]  ;;  %v65_v37 = vld [vmem:[%s5164_s0 + $0xc8] sm:$0xff]  ;;  %v66_v38 = vld [vmem:[%s5164_s0 + $0xd0] sm:$0xff] }
   0xe   :  { %3039 = vmatprep.subr.mxu0 %v75_v7  ;;  %v67_v39 = vld [vmem:[%s5164_s0 + $0xd8] sm:$0xff]  ;;  %v68_v40 = vld [vmem:[%s5164_s0 + $0xe0] sm:$0xff]  ;;  %v69_v41 = vld [vmem:[%s5164_s0 + $0xe8] sm:$0xff] }
   0xf   :  { %3040 = vmatpush3.msra.mxu0 %v75_v7  ;;  %v567_v42 = vld [vmem:[%s5165_s3 + $0x128] sm:$0xf]  ;;  %v566_v43 = vld [vmem:[%s5165_s3 + $0x120] sm:$0xf]  ;;  %v564_v44 = vld [vmem:[%s5165_s3 + $0x110] sm:$0xff] }
  0x10   :  { %3041 = vmatprep.subr.mxu0 %v74_v8  ;;  %v563_v45 = vld [vmem:[%s5165_s3 + $0x108] sm:$0xff]  ;;  %v561_v47 = vld [vmem:[%s5165_s3 + $0xf8] sm:$0xff]  ;;  %v605_v48 = vld [vmem:[%s5166_s4 + $0x120] sm:$0xf] }
  0x11   :  { %3042 = vmatpush3.msra.mxu0 %v74_v8  ;;  %v606_v46 = vld [vmem:[%s5166_s4 + $0x128] sm:$0xf]  ;;  %v560_v49 = vld [vmem:[%s5165_s3 + $0xf0] sm:$0xff]  ;;  %v558_v51 = vld [vmem:[%s5165_s3 + $0xe0] sm:$0xff] }
  0x12   :  { %3043 = vmatprep.subr.mxu0 %v73_v9  ;;  %2610 = vmatprep.subr.msk.mxu1 %vm639_vm2, %v606_v46  ;;  %v603_v50 = vld [vmem:[%s5166_s4 + $0x110] sm:$0xff]  ;;  %v602_v52 = vld [vmem:[%s5166_s4 + $0x108] sm:$0xff]  ;;  %v557_v53 = vld [vmem:[%s5165_s3 + $0xd8] sm:$0xff] }
  0x13   :  { %3044 = vmatpush3.msra.mxu0 %v73_v9  ;;  %2611 = vmatpush1.msk.msra.mxu1 %vm639_vm2, %v605_v48  ;;  %v600_v54 = vld [vmem:[%s5166_s4 + $0xf8] sm:$0xff]  ;;  %v555_v55 = vld [vmem:[%s5165_s3 + $0xc8] sm:$0xff]  ;;  %v599_v56 = vld [vmem:[%s5166_s4 + $0xf0] sm:$0xff] }
  0x14   :  { %3045 = vmatprep.subr.mxu0 %v72_v10  ;;  %657 = vmatprep.subr.mxu1 %v603_v50  ;;  %v554_v57 = vld [vmem:[%s5165_s3 + $0xc0] sm:$0xff]  ;;  %v552_v59 = vld [vmem:[%s5165_s3 + $0xb0] sm:$0xff]  ;;  %v596_v60 = vld [vmem:[%s5166_s4 + $0xd8] sm:$0xff] }
  0x15   :  { %3046 = vmatpush3.msra.mxu0 %v72_v10  ;;  %658 = vmatpush1.msra.mxu1 %v602_v52  ;;  %v597_v58 = vld [vmem:[%s5166_s4 + $0xe0] sm:$0xff]  ;;  %v551_v61 = vld [vmem:[%s5165_s3 + $0xa8] sm:$0xff]  ;;  %v549_v63 = vld [vmem:[%s5165_s3 + $0x98] sm:$0xff] }
  0x16   :  { %3047 = vmatprep.subr.mxu0 %v71_v11  ;;  %659 = vmatprep.subr.mxu1 %v600_v54  ;;  %v594_v62 = vld [vmem:[%s5166_s4 + $0xc8] sm:$0xff]  ;;  %v593_v0 = vld [vmem:[%s5166_s4 + $0xc0] sm:$0xff]  ;;  %v548_v1 = vld [vmem:[%s5165_s3 + $0x90] sm:$0xff] }
  0x17   :  { %3048 = vmatpush3.msra.mxu0 %v71_v11  ;;  %660 = vmatpush1.msra.mxu1 %v599_v56  ;;  %v591_v2 = vld [vmem:[%s5166_s4 + $0xb0] sm:$0xff]  ;;  %v546_v3 = vld [vmem:[%s5165_s3 + $0x80] sm:$0xff]  ;;  %v590_v4 = vld [vmem:[%s5166_s4 + $0xa8] sm:$0xff] }
  0x18   :  { %3049 = vmatprep.subr.mxu0 %v70_v12  ;;  %661 = vmatprep.subr.mxu1 %v597_v58  ;;  %v545_v5 = vld [vmem:[%s5165_s3 + $0x78] sm:$0xff]  ;;  %v543_v7 = vld [vmem:[%s5165_s3 + $0x68] sm:$0xff]  ;;  %v587_v8 = vld [vmem:[%s5166_s4 + $0x90] sm:$0xff] }
  0x19   :  { %3050 = vmatpush3.msra.mxu0 %v70_v12  ;;  %662 = vmatpush1.msra.mxu1 %v596_v60  ;;  %v588_v6 = vld [vmem:[%s5166_s4 + $0x98] sm:$0xff]  ;;  %v542_v9 = vld [vmem:[%s5165_s3 + $0x60] sm:$0xff]  ;;  %v540_v11 = vld [vmem:[%s5165_s3 + $0x50] sm:$0xff] }
  0x1a   :  { %3052 = vmatmul.mubr.msk.f32.vlgmr.msra.gmra.mxu0 %vm82_vm1, %v41_v13  ;;  %2633 = vmatprep.subr.msk.mxu0 %vm639_vm2, %v567_v42  ;;  %v585_v10 = vld [vmem:[%s5166_s4 + $0x80] sm:$0xff]  ;;  %v584_v12 = vld [vmem:[%s5166_s4 + $0x78] sm:$0xff]  ;;  %v539_v13 = vld [vmem:[%s5165_s3 + $0x48] sm:$0xff] }
  0x1b   :  { %3054 = vmatprep.mubr.msk.f32.mxu0 %vm82_vm1, %v42_v14  ;;  %2634 = vmatpush1.msk.msra.mxu0 %vm639_vm2, %v566_v43  ;;  %v582_v14 = vld [vmem:[%s5166_s4 + $0x68] sm:$0xff]  ;;  %v1176_v42 = vld [vmem:[%s5167_s5 + $0x40] sm:$0xff] }
  0x1c   :  { %936 = vmatprep.subr.mxu0 %v564_v44  ;;  %663 = vmatprep.subr.mxu1 %v594_v62  ;;  %v1173_v43 = vld [vmem:[%s5167_s5 + $0x28] sm:$0xff]  ;;  %v1170_v44 = vld [vmem:[%s5167_s5 + $0x10] sm:$0xff] }
  0x1d   :  { %937 = vmatpush1.msra.mxu0 %v563_v45  ;;  %664 = vmatpush1.msra.mxu1 %v593_v0 }
  0x1e   :  { %3055 = vmatmul.mubr.msk.f32.gmra.mxu0 %vm82_vm1, %v43_v15  ;;  %938 = vmatprep.subr.mxu0 %v561_v47  ;;  %v537_v15 = vld [vmem:[%s5165_s3 + $0x38] sm:$0xff] }
  0x1f   :  { %3057 = vmatprep.mubr.msk.f32.mxu0 %vm82_vm1, %v44_v16  ;;  %939 = vmatpush1.msra.mxu0 %v560_v49  ;;  %v581_v16 = vld [vmem:[%s5166_s4 + $0x60] sm:$0xff] }
  0x20   :  { %940 = vmatprep.subr.mxu0 %v558_v51  ;;  %665 = vmatprep.subr.mxu1 %v591_v2 }
  0x21   :  { %941 = vmatpush1.msra.mxu0 %v557_v53  ;;  %666 = vmatpush1.msra.mxu1 %v590_v4 }
  0x22   :  { %3058 = vmatmul.mubr.msk.f32.gmra.mxu0 %vm82_vm1, %v45_v17  ;;  %942 = vmatprep.subr.mxu0 %v555_v55  ;;  %v536_v17 = vld [vmem:[%s5165_s3 + $0x30] sm:$0xff] }
  0x23   :  { %3060 = vmatprep.mubr.msk.f32.mxu0 %vm82_vm1, %v46_v18  ;;  %943 = vmatpush1.msra.mxu0 %v554_v57  ;;  %v579_v18 = vld [vmem:[%s5166_s4 + $0x50] sm:$0xff] }
  0x24   :  { %944 = vmatprep.subr.mxu0 %v552_v59  ;;  %667 = vmatprep.subr.mxu1 %v588_v6 }
  0x25   :  { %945 = vmatpush1.msra.mxu0 %v551_v61  ;;  %668 = vmatpush1.msra.mxu1 %v587_v8 }
  0x26   :  { %3061 = vmatmul.mubr.msk.f32.gmra.mxu0 %vm82_vm1, %v47_v19  ;;  %946 = vmatprep.subr.mxu0 %v549_v63  ;;  %v534_v19 = vld [vmem:[%s5165_s3 + $0x20] sm:$0xff] }
  0x27   :  { %3063 = vmatprep.mubr.msk.f32.mxu0 %vm82_vm1, %v48_v20  ;;  %947 = vmatpush1.msra.mxu0 %v548_v1  ;;  %v578_v20 = vld [vmem:[%s5166_s4 + $0x48] sm:$0xff] }
  0x28   :  { %948 = vmatprep.subr.mxu0 %v546_v3  ;;  %669 = vmatprep.subr.mxu1 %v585_v10 }
  0x29   :  { %949 = vmatpush1.msra.mxu0 %v545_v5  ;;  %670 = vmatpush1.msra.mxu1 %v584_v12 }
  0x2a   :  { %3064 = vmatmul.mubr.msk.f32.gmra.mxu0 %vm82_vm1, %v49_v21  ;;  %950 = vmatprep.subr.mxu0 %v543_v7  ;;  %v533_v21 = vld [vmem:[%s5165_s3 + $0x18] sm:$0xff]  ;;  %v3670_v7 = vld [vmem:[%s5168_s2] ss:$0 sm:$0xff] }
  0x2b   :  { %3066 = vmatprep.mubr.msk.f32.mxu0 %vm82_vm1, %v50_v22  ;;  %951 = vmatpush1.msra.mxu0 %v542_v9  ;;  %v576_v22 = vld [vmem:[%s5166_s4 + $0x38] sm:$0xff] }
  0x2c   :  { %952 = vmatprep.subr.mxu0 %v540_v11  ;;  %671 = vmatprep.subr.mxu1 %v582_v14 }
  0x2d   :  { %953 = vmatpush1.msra.mxu0 %v539_v13  ;;  %672 = vmatpush1.msra.mxu1 %v581_v16  ;;  %v604_v16 = vld [vmem:[%s5166_s4 + $0x118] sm:$0xff] }
  0x2e   :  { %3067 = vmatmul.mubr.msk.f32.gmra.mxu0 %vm82_vm1, %v51_v23  ;;  %954 = vmatprep.subr.mxu0 %v537_v15  ;;  %v531_v23 = vld [vmem:[%s5165_s3 + $0x8] sm:$0xff] }
  0x2f   :  { %3069 = vmatprep.mubr.msk.f32.mxu0 %vm82_vm1, %v52_v24  ;;  %955 = vmatpush1.msra.mxu0 %v536_v17  ;;  %v575_v24 = vld [vmem:[%s5166_s4 + $0x30] sm:$0xff] }
  0x30   :  { %673 = vmatprep.subr.mxu1 %v579_v18  ;;  %956 = vmatprep.subr.mxu0 %v534_v19 }
  0x31   :  { %674 = vmatpush1.msra.mxu1 %v578_v20  ;;  %957 = vmatpush1.msra.mxu0 %v533_v21  ;;  %v601_v21 = vld [vmem:[%s5166_s4 + $0x100] sm:$0xff] }
  0x32   :  { %3070 = vmatmul.mubr.msk.f32.gmra.mxu0 %vm82_vm1, %v53_v25  ;;  %675 = vmatprep.subr.mxu1 %v576_v22  ;;  %v530_v25 = vld [vmem:[%s5165_s3] sm:$0xff] }
  0x33   :  { %3072 = vmatprep.mubr.msk.f32.mxu0 %vm82_vm1, %v54_v26  ;;  %958 = vmatprep.subr.mxu0 %v531_v23  ;;  %v573_v26 = vld [vmem:[%s5166_s4 + $0x20] sm:$0xff] }
  0x34   :  { %676 = vmatpush1.msra.mxu1 %v575_v24  ;;  %959 = vmatpush1.msra.mxu0 %v530_v25  ;;  %v598_v24 = vld [vmem:[%s5166_s4 + $0xe8] sm:$0xff] }
  0x35   :  { %677 = vmatprep.subr.mxu1 %v573_v26 }
  0x36   :  { %3073 = vmatmul.mubr.msk.f32.gmra.mxu0 %vm82_vm1, %v55_v27  ;;  %v5175_v27 = vmov 0.0  }
  0x37   :  { %3075 = vmatprep.mubr.msk.f32.mxu0 %vm82_vm1, %v56_v28  ;;  %v572_v28 = vld [vmem:[%s5166_s4 + $0x18] sm:$0xff]  ;;  %713 = vmatprep.mubr.f32.mxu1 %v5175_v27 }
  0x38   :  { %678 = vmatpush1.msra.mxu1 %v572_v28 }
  0x3a   :  { %3076 = vmatmul.mubr.msk.f32.gmra.mxu0 %vm82_vm1, %v57_v29  ;;  %v570_v29 = vld [vmem:[%s5166_s4 + $0x8] sm:$0xff] }
  0x3b   :  { %3078 = vmatprep.mubr.msk.f32.mxu0 %vm82_vm1, %v58_v30  ;;  %679 = vmatprep.subr.mxu1 %v570_v29  ;;  %v569_v30 = vld [vmem:[%s5166_s4] sm:$0xff] }
  0x3c   :  { %680 = vmatpush1.msra.mxu1 %v569_v30  ;;  %v595_v30 = vld [vmem:[%s5166_s4 + $0xd0] sm:$0xff] }
  0x3e   :  { %3079 = vmatmul.mubr.msk.f32.gmra.mxu0 %vm82_vm1, %v59_v31  ;;  %v3604_v31 = vld [vmem:[%s5166_s4 + $0x130] sm:$0xf] }
  0x3f   :  { %3081 = vmatprep.mubr.msk.f32.mxu0 %vm82_vm1, %v60_v32  ;;  %3096 = vmatprep.subr.msk.mxu1 %vm639_vm2, %v3604_v31  ;;  %v1206_v32 = vld [vmem:[%s5167_s5 + $0x130] sm:$0xf] }
  0x40   :  { %3178 = vmatprep.subr.msk.mxu0 %vm639_vm2, %v1206_v32 }
  0x42   :  { %3082 = vmatmul.mubr.msk.f32.gmra.mxu0 %vm82_vm1, %v61_v33  ;;  %v1203_v33 = vld [vmem:[%s5167_s5 + $0x118] sm:$0xff] }
  0x43   :  { %3084 = vmatprep.mubr.msk.f32.mxu0 %vm82_vm1, %v62_v34  ;;  %v1200_v34 = vld [vmem:[%s5167_s5 + $0x100] sm:$0xff] }
  0x46   :  { %3085 = vmatmul.mubr.msk.f32.gmra.mxu0 %vm82_vm1, %v63_v35  ;;  %v1197_v35 = vld [vmem:[%s5167_s5 + $0xe8] sm:$0xff] }
  0x47   :  { %3087 = vmatprep.mubr.msk.f32.mxu0 %vm82_vm1, %v64_v36  ;;  %v1194_v36 = vld [vmem:[%s5167_s5 + $0xd0] sm:$0xff] }
  0x4a   :  { %3088 = vmatmul.mubr.msk.f32.gmra.mxu0 %vm82_vm1, %v65_v37  ;;  %v1191_v37 = vld [vmem:[%s5167_s5 + $0xb8] sm:$0xff] }
  0x4b   :  { %3090 = vmatprep.mubr.msk.f32.mxu0 %vm82_vm1, %v66_v38  ;;  %v1188_v38 = vld [vmem:[%s5167_s5 + $0xa0] sm:$0xff] }
  0x4e   :  { %3091 = vmatmul.mubr.msk.f32.gmra.mxu0 %vm82_vm1, %v67_v39  ;;  %v1185_v39 = vld [vmem:[%s5167_s5 + $0x88] sm:$0xff] }
  0x4f   :  { %3093 = vmatprep.mubr.msk.f32.mxu0 %vm82_vm1, %v68_v40  ;;  %v1182_v40 = vld [vmem:[%s5167_s5 + $0x70] sm:$0xff] }
  0x52   :  { %3094 = vmatmul.mubr.msk.f32.gmra.mxu0 %vm82_vm1, %v69_v41  ;;  %v1179_v41 = vld [vmem:[%s5167_s5 + $0x58] sm:$0xff] }
  0x53   :  { %992 = vmatprep.mubr.f32.mxu0 %v5175_v27 }
  0x56   :  { %993 = vmatmul.mubr.f32.vlgmr.msra.gmra.mxu0 %v5175_v27 }
  0x57   :  { %998 = vmatprep.mubr.f32.mxu0 %v5175_v27  ;;  %3179 = vmatpush3.msk.msra.mxu0 %vm639_vm2, %v1206_v32 }
  0x58   :  { %3180 = vmatprep.subr.mxu0 %v1203_v33 }
  0x59   :  { %3181 = vmatpush3.msra.mxu0 %v1203_v33 }
  0x5a   :  { %3182 = vmatprep.subr.mxu0 %v1200_v34 }
  0x5b   :  { %3183 = vmatpush3.msra.mxu0 %v1200_v34 }
  0x5c   :  { %3184 = vmatprep.subr.mxu0 %v1197_v35 }
  0x5d   :  { %3185 = vmatpush3.msra.mxu0 %v1197_v35  ;;  %v592_v35 = vld [vmem:[%s5166_s4 + $0xb8] sm:$0xff] }
  0x5e   :  { %3186 = vmatprep.subr.mxu0 %v1194_v36 }
  0x5f   :  { %3187 = vmatpush3.msra.mxu0 %v1194_v36 }
  0x60   :  { %3188 = vmatprep.subr.mxu0 %v1191_v37 }
  0x61   :  { %3189 = vmatpush3.msra.mxu0 %v1191_v37 }
  0x62   :  { %3190 = vmatprep.subr.mxu0 %v1188_v38 }
  0x63   :  { %3191 = vmatpush3.msra.mxu0 %v1188_v38  ;;  %v589_v38 = vld [vmem:[%s5166_s4 + $0xa0] sm:$0xff] }
  0x64   :  { %3192 = vmatprep.subr.mxu0 %v1185_v39 }
  0x65   :  { %3193 = vmatpush3.msra.mxu0 %v1185_v39 }
  0x66   :  { %3194 = vmatprep.subr.mxu0 %v1182_v40 }
  0x67   :  { %3195 = vmatpush3.msra.mxu0 %v1182_v40 }
  0x68   :  { %3196 = vmatprep.subr.mxu0 %v1179_v41 }
  0x69   :  { %3197 = vmatpush3.msra.mxu0 %v1179_v41 }
  0x6a   :  { %3198 = vmatprep.subr.mxu0 %v1176_v42 }
  0x6b   :  { %3199 = vmatpush3.msra.mxu0 %v1176_v42 }
  0x6c   :  { %3200 = vmatprep.subr.mxu0 %v1173_v43 }
  0x6d   :  { %3201 = vmatpush3.msra.mxu0 %v1173_v43  ;;  %v586_v43 = vld [vmem:[%s5166_s4 + $0x88] sm:$0xff] }
  0x6e   :  { %3202 = vmatprep.subr.mxu0 %v1170_v44 }
  0x6f   :  { %3203 = vmatpush3.msra.mxu0 %v1170_v44 }
  0xda   :  { %v3053_v45 = vpop.f32.mrf.mxu0 }
  0xdc   :  { %v243_v46 = vpop.f32.mrf.mxu0 }
  0xde   :  { %v3056_v47 = vpop.f32.mrf.mxu0 }
  0xe0   :  { %v253_v48 = vpop.f32.mrf.mxu0 }
  0xe2   :  { %v3649_v49 = vpop.f32.mrf.mxu0 }
  0xe4   :  { %v263_v50 = vpop.f32.mrf.mxu0 }
  0xe6   :  { %v3651_v51 = vpop.f32.mrf.mxu0 }
  0xe8   :  { %v3653_v52 = vpop.f32.mrf.mxu0 }
  0xea   :  { %v3655_v53 = vpop.f32.mrf.mxu0 }
  0xec   :  { %v3657_v54 = vpop.f32.mrf.mxu0 }
  0xee   :  { %v3068_v55 = vpop.f32.mrf.mxu0 }
  0xef   :  { %v393_v2 = vmax.f32 %v3053_v45, %v3068_v55 }
  0xf0   :  { %v293_v56 = vpop.f32.mrf.mxu0 }
  0xf1   :  { %v392_v3 = vmax.f32 %v243_v46, %v293_v56 }
  0xf2   :  { %v3071_v57 = vpop.f32.mrf.mxu0 }
  0xf3   :  { %v395_v17 = vmax.f32 %v3056_v47, %v3071_v57  ;;  %v577_v57 = vld [vmem:[%s5166_s4 + $0x40] sm:$0xff] }
  0xf4   :  { %v303_v58 = vpop.f32.mrf.mxu0 }
  0xf5   :  { %v394_v9 = vmax.f32 %v253_v48, %v303_v58 }
  0xf6   :  { %v3074_v59 = vpop.f32.mrf.mxu0 }
  0xf8   :  { %v313_v60 = vpop.f32.mrf.mxu0 }
  0xf9   :  { %v396_v23 = vmax.f32 %v263_v50, %v313_v60 }
  0xfa   :  { %v3659_v61 = vpop.f32.mrf.mxu0 }
  0xfb   :  { %v399_v44 = vmax.f32 %v3651_v51, %v3659_v61 }
  0xfc   :  { %v3661_v62 = vpop.f32.mrf.mxu0 }
  0xfd   :  { %v398_v37 = vmax.f32 %v3653_v52, %v3661_v62 }
  0xfe   :  { %v3663_v63 = vpop.f32.mrf.mxu0 }
  0xff   :  { %v401_v56 = vmax.f32 %v3655_v53, %v3663_v63  ;;  %v574_v53 = vld [vmem:[%s5166_s4 + $0x28] sm:$0xff]  ;;  %v571_v63 = vld [vmem:[%s5166_s4 + $0x10] sm:$0xff] }
 0x100   :  { %v3665_v0 = vpop.f32.mrf.mxu0 }
 0x101   :  { %v400_v50 = vmax.f32 %v3657_v54, %v3665_v0  ;;  %v580_v54 = vld [vmem:[%s5166_s4 + $0x58] sm:$0xff] }
 0x102   :  { %v3083_v1 = vpop.f32.mrf.mxu0 }
 0x103   :  { %v403_v5 = vmax.f32 %v393_v2, %v3083_v1  ;;  %v568_v1 = vld [vmem:[%s5165_s3 + $0x130] sm:$0xf]  ;;  %v565_v2 = vld [vmem:[%s5165_s3 + $0x118] sm:$0xff] }
 0x104   :  { %v343_v4 = vpop.f32.mrf.mxu0 }
 0x105   :  { %v402_v6 = vmax.f32 %v392_v3, %v343_v4  ;;  %v420_v12 = vadd.f32 %v3670_v7, %v403_v5  ;;  %v562_v3 = vld [vmem:[%s5165_s3 + $0x100] sm:$0xff]  ;;  %v559_v4 = vld [vmem:[%s5165_s3 + $0xe8] sm:$0xff]  ;;  %v556_v5 = vld [vmem:[%s5165_s3 + $0xd0] sm:$0xff] }
 0x106   :  { %v3086_v8 = vpop.f32.mrf.mxu0 }
 0x107   :  { %v419_v10 = vadd.f32 %v3670_v7, %v402_v6  ;;  %v3686_v18 = vmax.f32 %v420_v12, 0.0  ;;  %v405_v19 = vmax.f32 %v395_v17, %v3086_v8  ;;  %v553_v6 = vld [vmem:[%s5165_s3 + $0xb8] sm:$0xff]  ;;  %v547_v8 = vld [vmem:[%s5165_s3 + $0x88] sm:$0xff]  ;;  %v1202_v17 = vld [vmem:[%s5167_s5 + $0x110] sm:$0xff] }
 0x108   :  { %v353_v11 = vpop.f32.mrf.mxu0  ;;  %v535_v12 = vld [vmem:[%s5165_s3 + $0x28] sm:$0xff] }
 0x109   :  { %v3674_v13 = vmax.f32 %v419_v10, 0.0  ;;  %v404_v14 = vmax.f32 %v394_v9, %v353_v11  ;;  %v422_v25 = vadd.f32 %v3670_v7, %v405_v19  ;;  %v544_v9 = vld [vmem:[%s5165_s3 + $0x70] sm:$0xff]  ;;  %v541_v10 = vld [vmem:[%s5165_s3 + $0x58] sm:$0xff]  ;;  %v538_v11 = vld [vmem:[%s5165_s3 + $0x40] sm:$0xff] }
 0x10a   :  { %v3089_v15 = vpop.f32.mrf.mxu0  ;;  %v1201_v19 = vld [vmem:[%s5167_s5 + $0x108] sm:$0xff] }
 0x10b   :  { %2612 = vmatmul.mubr.msk.f32.vlgmr.msra.gmra.mxu1 %vm608_vm3, %v3674_v13  ;;  %2635 = vmatmul.mubr.msk.f32.gmra.mxu0 %vm608_vm3, %v3674_v13  ;;  %v421_v20 = vadd.f32 %v3670_v7, %v404_v14  ;;  %v3714_v32 = vmax.f32 %v422_v25, 0.0  ;;  %v532_v14 = vld [vmem:[%s5165_s3 + $0x10] sm:$0xff] }
 0x10c   :  { %3097 = vmatpush3.msk.msra.mxu1 %vm639_vm2, %v3604_v31  ;;  %719 = vmatprep.mubr.f32.mxu1 %v5175_v27  ;;  %v363_v22 = vpop.f32.mrf.mxu0  ;;  %v397_v31 = vmax.f32 %v3649_v49, %v3074_v59  ;;  %v583_v49 = vld [vmem:[%s5166_s4 + $0x70] sm:$0xff] }
 0x10d   :  { %3098 = vmatprep.subr.mxu1 %v604_v16  ;;  %1004 = vmatprep.mubr.f32.mxu0 %v5175_v27  ;;  %v3702_v26 = vmax.f32 %v421_v20, 0.0  ;;  %v406_v28 = vmax.f32 %v396_v23, %v363_v22  ;;  %v1199_v20 = vld [vmem:[%s5167_s5 + $0xf8] sm:$0xff]  ;;  %v1193_v23 = vld [vmem:[%s5167_s5 + $0xc8] sm:$0xff]  ;;  %v1190_v25 = vld [vmem:[%s5167_s5 + $0xb0] sm:$0xff] }
 0x10e   :  { %3099 = vmatpush3.msra.mxu1 %v604_v16  ;;  %v3092_v29 = vpop.f32.mrf.mxu0  ;;  %v407_v33 = vmax.f32 %v397_v31, %v3089_v15  ;;  %v1205_v15 = vld [vmem:[%s5167_s5 + $0x128] sm:$0xf]  ;;  %v1204_v16 = vld [vmem:[%s5167_s5 + $0x120] sm:$0xf]  ;;  %v1195_v22 = vld [vmem:[%s5167_s5 + $0xd8] sm:$0xff] }
 0x10f   :  { %2613 = vmatmul.mubr.msk.f32.gmra.mxu1 %vm608_vm3, %v3686_v18  ;;  %2636 = vmatmul.mubr.msk.f32.gmra.mxu0 %vm608_vm3, %v3686_v18  ;;  %v423_v34 = vadd.f32 %v3670_v7, %v406_v28  ;;  %v409_v46 = vmax.f32 %v399_v44, %v3092_v29  ;;  %v1189_v28 = vld [vmem:[%s5167_s5 + $0xa8] sm:$0xff]  ;;  %v1187_v29 = vld [vmem:[%s5167_s5 + $0x98] sm:$0xff]  ;;  %v1184_v31 = vld [vmem:[%s5167_s5 + $0x80] sm:$0xff] }
 0x110   :  { %3100 = vmatprep.subr.mxu1 %v601_v21  ;;  %725 = vmatprep.mubr.f32.mxu1 %v5175_v27  ;;  %v373_v36 = vpop.f32.mrf.mxu0  ;;  %v424_v39 = vadd.f32 %v3670_v7, %v407_v33  ;;  %v1183_v33 = vld [vmem:[%s5167_s5 + $0x78] sm:$0xff]  ;;  %v1168_v44 = vld [vmem:[%s5167_s5] sm:$0xff] }
 0x111   :  { %3101 = vmatpush3.msra.mxu1 %v601_v21  ;;  %1010 = vmatprep.mubr.f32.mxu0 %v5175_v27  ;;  %v3732_v40 = vmax.f32 %v423_v34, 0.0  ;;  %v408_v41 = vmax.f32 %v398_v37, %v373_v36  ;;  %v426_v51 = vadd.f32 %v3670_v7, %v409_v46  ;;  %v1196_v21 = vld [vmem:[%s5167_s5 + $0xe0] sm:$0xff]  ;;  %v1181_v34 = vld [vmem:[%s5167_s5 + $0x68] sm:$0xff]  ;;  %v1178_v36 = vld [vmem:[%s5167_s5 + $0x50] sm:$0xff] }
 0x112   :  { %3102 = vmatprep.subr.mxu1 %v598_v24  ;;  %v3095_v42 = vpop.f32.mrf.mxu0  ;;  %v3745_v45 = vmax.f32 %v424_v39, 0.0  ;;  %v1177_v37 = vld [vmem:[%s5167_s5 + $0x48] sm:$0xff]  ;;  %v1174_v39 = vld [vmem:[%s5167_s5 + $0x30] sm:$0xff]  ;;  %v1639_v46 = vld [vmem:[%s5169_s7 + $0xd8] sm:$0xff] }
 0x113   :  { %2614 = vmatmul.mubr.msk.f32.gmra.mxu1 %vm608_vm3, %v3702_v26  ;;  %2637 = vmatmul.mubr.msk.f32.gmra.mxu0 %vm608_vm3, %v3702_v26  ;;  %v425_v47 = vadd.f32 %v3670_v7, %v408_v41  ;;  %v3776_v58 = vmax.f32 %v426_v51, 0.0  ;;  %v411_v59 = vmax.f32 %v401_v56, %v3095_v42  ;;  %v1172_v41 = vld [vmem:[%s5167_s5 + $0x20] sm:$0xff]  ;;  %v1171_v42 = vld [vmem:[%s5167_s5 + $0x18] sm:$0xff]  ;;  %v1633_v51 = vld [vmem:[%s5169_s7 + $0xa8] sm:$0xff] }
 0x114   :  { %3103 = vmatpush3.msra.mxu1 %v598_v24  ;;  %731 = vmatprep.mubr.f32.mxu1 %v5175_v27  ;;  %v383_v48 = vpop.f32.mrf.mxu0  ;;  %v1192_v24 = vld [vmem:[%s5167_s5 + $0xc0] sm:$0xff]  ;;  %v1630_v56 = vld [vmem:[%s5169_s7 + $0x90] sm:$0xff] }
 0x115   :  { %1016 = vmatprep.mubr.f32.mxu0 %v5175_v27  ;;  %3104 = vmatprep.subr.mxu1 %v595_v30  ;;  %v3761_v52 = vmax.f32 %v425_v47, 0.0  ;;  %v410_v55 = vmax.f32 %v400_v50, %v383_v48  ;;  %v428_v61 = vadd.f32 %v3670_v7, %v411_v59  ;;  %v1637_v47 = vld [vmem:[%s5169_s7 + $0xc8] sm:$0xff]  ;;  %v1636_v48 = vld [vmem:[%s5169_s7 + $0xc0] sm:$0xff]  ;;  %v1634_v50 = vld [vmem:[%s5169_s7 + $0xb0] sm:$0xff] }
 0x116   :  { %3105 = vmatpush3.msra.mxu1 %v595_v30  ;;  %v1186_v30 = vld [vmem:[%s5167_s5 + $0x90] sm:$0xff]  ;;  %v2707_v59 = vld [vmem:[%s5169_s7 + $0x348] sm:$0xff] }
 0x117   :  { %2615 = vmatmul.mubr.msk.f32.gmra.mxu1 %vm608_vm3, %v3714_v32  ;;  %2638 = vmatmul.mubr.msk.f32.gmra.mxu0 %vm608_vm3, %v3714_v32  ;;  %v427_v60 = vadd.f32 %v3670_v7, %v410_v55  ;;  %v3802_v0 = vmax.f32 %v428_v61, 0.0  ;;  %v550_v7 = vld [vmem:[%s5165_s3 + $0xa0] sm:$0xff]  ;;  %v1631_v55 = vld [vmem:[%s5169_s7 + $0x98] sm:$0xff] }
 0x118   :  { %737 = vmatprep.mubr.f32.mxu1 %v5175_v27  ;;  %3106 = vmatprep.subr.mxu1 %v592_v35  ;;  %v1627_v61 = vld [vmem:[%s5169_s7 + $0x78] sm:$0xff] }
 0x119   :  { %1022 = vmatprep.mubr.f32.mxu0 %v5175_v27  ;;  %3107 = vmatpush3.msra.mxu1 %v592_v35  ;;  %v3789_v62 = vmax.f32 %v427_v60, 0.0  ;;  %v1180_v35 = vld [vmem:[%s5167_s5 + $0x60] sm:$0xff] }
 0x11a   :  { %3108 = vmatprep.subr.mxu1 %v589_v38  ;;  %v1628_v60 = vld [vmem:[%s5169_s7 + $0x80] sm:$0xff] }
 0x11b   :  { %2616 = vmatmul.mubr.msk.f32.gmra.mxu1 %vm608_vm3, %v3732_v40  ;;  %2639 = vmatmul.mubr.msk.f32.gmra.mxu0 %vm608_vm3, %v3732_v40 }
 0x11c   :  { %743 = vmatprep.mubr.f32.mxu1 %v5175_v27  ;;  %3109 = vmatpush3.msra.mxu1 %v589_v38  ;;  %v1175_v38 = vld [vmem:[%s5167_s5 + $0x38] sm:$0xff] }
 0x11d   :  { %1028 = vmatprep.mubr.f32.mxu0 %v5175_v27  ;;  %3110 = vmatprep.subr.mxu1 %v586_v43 }
 0x11e   :  { %3111 = vmatpush3.msra.mxu1 %v586_v43  ;;  %v1169_v43 = vld [vmem:[%s5167_s5 + $0x8] sm:$0xff] }
 0x11f   :  { %2617 = vmatmul.mubr.msk.f32.gmra.mxu1 %vm608_vm3, %v3745_v45  ;;  %2640 = vmatmul.mubr.msk.f32.gmra.mxu0 %vm608_vm3, %v3745_v45 }
 0x120   :  { %749 = vmatprep.mubr.f32.mxu1 %v5175_v27  ;;  %1034 = vmatprep.mubr.f32.mxu0 %v5175_v27 }
 0x121   :  { %3112 = vmatprep.subr.mxu1 %v583_v49 }
 0x122   :  { %3113 = vmatpush3.msra.mxu1 %v583_v49  ;;  %v1635_v49 = vld [vmem:[%s5169_s7 + $0xb8] sm:$0xff] }
 0x123   :  { %2618 = vmatmul.mubr.msk.f32.gmra.mxu1 %vm608_vm3, %v3761_v52  ;;  %2641 = vmatmul.mubr.msk.f32.gmra.mxu0 %vm608_vm3, %v3761_v52 }
 0x124   :  { %755 = vmatprep.mubr.f32.mxu1 %v5175_v27  ;;  %3114 = vmatprep.subr.mxu1 %v580_v54 }
 0x125   :  { %1040 = vmatprep.mubr.f32.mxu0 %v5175_v27  ;;  %3115 = vmatpush3.msra.mxu1 %v580_v54  ;;  %v2709_v54 = vld [vmem:[%s5169_s7 + $0x358] sm:$0xff] }
 0x126   :  { %3116 = vmatprep.subr.mxu1 %v577_v57  ;;  %1939 = vmatprep.subr.mxu0 %v2709_v54  ;;  %v1663_v54 = vld [vmem:[%s5169_s7 + $0x198] sm:$0xff] }
 0x127   :  { %2619 = vmatmul.mubr.msk.f32.gmra.mxu1 %vm608_vm3, %v3776_v58  ;;  %2642 = vmatmul.mubr.msk.f32.gmra.mxu0 %vm608_vm3, %v3776_v58 }
 0x128   :  { %761 = vmatprep.mubr.f32.mxu1 %v5175_v27  ;;  %3117 = vmatpush3.msra.mxu1 %v577_v57  ;;  %v2708_v57 = vld [vmem:[%s5169_s7 + $0x350] sm:$0xff] }
 0x129   :  { %1046 = vmatprep.mubr.f32.mxu0 %v5175_v27  ;;  %3118 = vmatprep.subr.mxu1 %v574_v53 }
 0x12a   :  { %3119 = vmatpush3.msra.mxu1 %v574_v53  ;;  %v2706_v53 = vld [vmem:[%s5169_s7 + $0x340] sm:$0xff] }
 0x12b   :  { %2620 = vmatmul.mubr.msk.f32.gmra.mxu1 %vm608_vm3, %v3789_v62  ;;  %2643 = vmatmul.mubr.msk.f32.gmra.mxu0 %vm608_vm3, %v3789_v62 }
 0x12c   :  { %3204 = vmatprep.mubr.msk.f32.mxu0 %vm608_vm3, %v3686_v18  ;;  %767 = vmatprep.mubr.f32.mxu1 %v5175_v27 }
 0x12d   :  { %3120 = vmatprep.subr.mxu1 %v571_v63 }
 0x12e   :  { %3121 = vmatpush3.msra.mxu1 %v571_v63  ;;  %v1626_v63 = vld [vmem:[%s5169_s7 + $0x70] sm:$0xff] }
 0x12f   :  { %2621 = vmatmul.mubr.msk.f32.gmra.mxu1 %vm608_vm3, %v3802_v0  ;;  %3205 = vmatmul.mubr.msk.f32.vlgmr.msra.gmra.mxu0 %vm608_vm3, %v3702_v26 }
 0x130   :  { %3122 = vmatprep.mubr.msk.f32.mxu1 %vm608_vm3, %v3674_v13  ;;  %3207 = vmatprep.mubr.msk.f32.mxu0 %vm608_vm3, %v3714_v32 }
 0x131   :  { %3137 = vmatprep.subr.msk.mxu1 %vm639_vm2, %v568_v1  ;;  %1940 = vmatpush1.msra.mxu0 %v2708_v57  ;;  %v1662_v57 = vld [vmem:[%s5169_s7 + $0x190] sm:$0xff] }
 0x132   :  { %1941 = vmatprep.subr.mxu0 %v2707_v59  ;;  %v1661_v59 = vld [vmem:[%s5169_s7 + $0x188] sm:$0xff] }
 0x133   :  { %3123 = vmatmul.mubr.msk.f32.vlgmr.msra.gmra.mxu1 %vm608_vm3, %v3686_v18  ;;  %3208 = vmatmul.mubr.msk.f32.gmra.mxu0 %vm608_vm3, %v3732_v40 }
 0x134   :  { %3138 = vmatpush3.msk.msra.mxu1 %vm639_vm2, %v568_v1  ;;  %3125 = vmatprep.mubr.msk.f32.mxu1 %vm608_vm3, %v3702_v26  ;;  %v2704_v1 = vld [vmem:[%s5169_s7 + $0x330] sm:$0xff] }
 0x135   :  { %3139 = vmatprep.subr.mxu1 %v565_v2  ;;  %3210 = vmatprep.mubr.msk.f32.mxu0 %vm608_vm3, %v3745_v45 }
 0x136   :  { %3140 = vmatpush3.msra.mxu1 %v565_v2  ;;  %1942 = vmatpush1.msra.mxu0 %v2706_v53  ;;  %v1625_v2 = vld [vmem:[%s5169_s7 + $0x68] sm:$0xff]  ;;  %v1660_v53 = vld [vmem:[%s5169_s7 + $0x180] sm:$0xff] }
 0x137   :  { %3141 = vmatprep.subr.mxu1 %v562_v3  ;;  %3126 = vmatmul.mubr.msk.f32.gmra.mxu1 %vm608_vm3, %v3714_v32 }
 0x138   :  { %3142 = vmatpush3.msra.mxu1 %v562_v3  ;;  %3211 = vmatmul.mubr.msk.f32.gmra.mxu0 %vm608_vm3, %v3761_v52  ;;  %v2703_v3 = vld [vmem:[%s5169_s7 + $0x328] sm:$0xff] }
 0x139   :  { %3128 = vmatprep.mubr.msk.f32.mxu1 %vm608_vm3, %v3732_v40  ;;  %3143 = vmatprep.subr.mxu1 %v559_v4 }
 0x13a   :  { %3213 = vmatprep.mubr.msk.f32.mxu0 %vm608_vm3, %v3776_v58  ;;  %3144 = vmatpush3.msra.mxu1 %v559_v4  ;;  %v2702_v4 = vld [vmem:[%s5169_s7 + $0x320] sm:$0xff] }
 0x13b   :  { %3145 = vmatprep.subr.mxu1 %v556_v5  ;;  %3129 = vmatmul.mubr.msk.f32.gmra.mxu1 %vm608_vm3, %v3745_v45 }
 0x13c   :  { %3146 = vmatpush3.msra.mxu1 %v556_v5  ;;  %3214 = vmatmul.mubr.msk.f32.gmra.mxu0 %vm608_vm3, %v3789_v62  ;;  %v1623_v5 = vld [vmem:[%s5169_s7 + $0x58] sm:$0xff] }
 0x13d   :  { %3131 = vmatprep.mubr.msk.f32.mxu1 %vm608_vm3, %v3761_v52  ;;  %3147 = vmatprep.subr.mxu1 %v553_v6 }
 0x13e   :  { %3216 = vmatprep.mubr.msk.f32.mxu0 %vm608_vm3, %v3802_v0  ;;  %3148 = vmatpush3.msra.mxu1 %v553_v6  ;;  %v2701_v6 = vld [vmem:[%s5169_s7 + $0x318] sm:$0xff] }
 0x13f   :  { %3149 = vmatprep.subr.mxu1 %v550_v7  ;;  %3132 = vmatmul.mubr.msk.f32.gmra.mxu1 %vm608_vm3, %v3776_v58 }
 0x140   :  { %3150 = vmatpush3.msra.mxu1 %v550_v7  ;;  %3134 = vmatprep.mubr.msk.f32.mxu1 %vm608_vm3, %v3789_v62  ;;  %v1622_v7 = vld [vmem:[%s5169_s7 + $0x50] sm:$0xff] }
 0x141   :  { %3151 = vmatprep.subr.mxu1 %v547_v8  ;;  %3217 = vmatmul.mubr.f32.gmra.mxu0 %v5175_v27 }
 0x142   :  { %3152 = vmatpush3.msra.mxu1 %v547_v8  ;;  %v2700_v8 = vld [vmem:[%s5169_s7 + $0x310] sm:$0xff] }
 0x143   :  { %3153 = vmatprep.subr.mxu1 %v544_v9  ;;  %3135 = vmatmul.mubr.msk.f32.gmra.mxu1 %vm608_vm3, %v3802_v0 }
 0x144   :  { %3154 = vmatpush3.msra.mxu1 %v544_v9  ;;  %3163 = vmatprep.mubr.f32.mxu1 %v5175_v27  ;;  %v1621_v9 = vld [vmem:[%s5169_s7 + $0x48] sm:$0xff] }
 0x145   :  { %3155 = vmatprep.subr.mxu1 %v541_v10 }
 0x146   :  { %3156 = vmatpush3.msra.mxu1 %v541_v10  ;;  %v2699_v10 = vld [vmem:[%s5169_s7 + $0x308] sm:$0xff] }
 0x147   :  { %3157 = vmatprep.subr.mxu1 %v538_v11 }
 0x148   :  { %3158 = vmatpush3.msra.mxu1 %v538_v11  ;;  %v1620_v11 = vld [vmem:[%s5169_s7 + $0x40] sm:$0xff] }
 0x149   :  { %3159 = vmatprep.subr.mxu1 %v535_v12 }
 0x14a   :  { %3160 = vmatpush3.msra.mxu1 %v535_v12  ;;  %v2698_v12 = vld [vmem:[%s5169_s7 + $0x300] sm:$0xff] }
 0x14b   :  { %3161 = vmatprep.subr.mxu1 %v532_v14 }
 0x14c   :  { %3162 = vmatpush3.msra.mxu1 %v532_v14  ;;  %v1619_v14 = vld [vmem:[%s5169_s7 + $0x38] sm:$0xff] }
 0x14d   :  { %3164 = vmatmul.mubr.msk.f32.vlgmr.msra.gmra.mxu1 %vm608_vm3, %v3674_v13  ;;  %2654 = vmatprep.subr.msk.mxu1 %vm639_vm2, %v1205_v15  ;;  %v1198_v13 = vld [vmem:[%s5167_s5 + $0xf0] sm:$0xff]  ;;  %v2697_v15 = vld [vmem:[%s5169_s7 + $0x2f8] sm:$0xff] }
 0x14e   :  { %3166 = vmatprep.mubr.msk.f32.mxu1 %vm608_vm3, %v3686_v18  ;;  %2655 = vmatpush1.msk.msra.mxu1 %vm639_vm2, %v1204_v16  ;;  %v1618_v16 = vld [vmem:[%s5169_s7 + $0x30] sm:$0xff] }
 0x14f   :  { %1254 = vmatprep.subr.mxu1 %v1202_v17  ;;  %v2696_v17 = vld [vmem:[%s5169_s7 + $0x2f0] sm:$0xff] }
 0x150   :  { %1255 = vmatpush1.msra.mxu1 %v1201_v19  ;;  %v1617_v19 = vld [vmem:[%s5169_s7 + $0x28] sm:$0xff] }
 0x151   :  { %3167 = vmatmul.mubr.msk.f32.gmra.mxu1 %vm608_vm3, %v3702_v26  ;;  %1256 = vmatprep.subr.mxu1 %v1199_v20  ;;  %v2695_v20 = vld [vmem:[%s5169_s7 + $0x2e8] sm:$0xff] }
 0x152   :  { %3169 = vmatprep.mubr.msk.f32.mxu1 %vm608_vm3, %v3714_v32  ;;  %1257 = vmatpush1.msra.mxu1 %v1198_v13  ;;  %v1616_v13 = vld [vmem:[%s5169_s7 + $0x20] sm:$0xff] }
 0x153   :  { %1258 = vmatprep.subr.mxu1 %v1196_v21  ;;  %v2694_v21 = vld [vmem:[%s5169_s7 + $0x2e0] sm:$0xff] }
 0x154   :  { %1259 = vmatpush1.msra.mxu1 %v1195_v22  ;;  %v1615_v22 = vld [vmem:[%s5169_s7 + $0x18] sm:$0xff] }
 0x155   :  { %3170 = vmatmul.mubr.msk.f32.gmra.mxu1 %vm608_vm3, %v3732_v40  ;;  %1260 = vmatprep.subr.mxu1 %v1193_v23  ;;  %v2693_v23 = vld [vmem:[%s5169_s7 + $0x2d8] sm:$0xff] }
 0x156   :  { %3172 = vmatprep.mubr.msk.f32.mxu1 %vm608_vm3, %v3745_v45  ;;  %1261 = vmatpush1.msra.mxu1 %v1192_v24  ;;  %v1614_v24 = vld [vmem:[%s5169_s7 + $0x10] sm:$0xff] }
 0x157   :  { %1262 = vmatprep.subr.mxu1 %v1190_v25  ;;  %v2692_v25 = vld [vmem:[%s5169_s7 + $0x2d0] sm:$0xff] }
 0x158   :  { %1263 = vmatpush1.msra.mxu1 %v1189_v28  ;;  %v1613_v28 = vld [vmem:[%s5169_s7 + $0x8] sm:$0xff] }
 0x159   :  { %3173 = vmatmul.mubr.msk.f32.gmra.mxu1 %vm608_vm3, %v3761_v52  ;;  %1264 = vmatprep.subr.mxu1 %v1187_v29  ;;  %v2691_v29 = vld [vmem:[%s5169_s7 + $0x2c8] sm:$0xff] }
 0x15a   :  { %3175 = vmatprep.mubr.msk.f32.mxu1 %vm608_vm3, %v3776_v58  ;;  %1265 = vmatpush1.msra.mxu1 %v1186_v30  ;;  %v1612_v30 = vld [vmem:[%s5169_s7] sm:$0xff] }
 0x15b   :  { %1266 = vmatprep.subr.mxu1 %v1184_v31  ;;  %v2690_v31 = vld [vmem:[%s5169_s7 + $0x2c0] sm:$0xff] }
 0x15c   :  { %1267 = vmatpush1.msra.mxu1 %v1183_v33  ;;  %v1675_v33 = vld [vmem:[%s5169_s7 + $0x1f8] sm:$0xff] }
 0x15d   :  { %3176 = vmatmul.mubr.msk.f32.gmra.mxu1 %vm608_vm3, %v3789_v62  ;;  %1268 = vmatprep.subr.mxu1 %v1181_v34  ;;  %v2689_v34 = vld [vmem:[%s5169_s7 + $0x2b8] sm:$0xff] }
 0x15e   :  { %1269 = vmatpush1.msra.mxu1 %v1180_v35  ;;  %1310 = vmatprep.mubr.f32.mxu1 %v5175_v27  ;;  %v1674_v35 = vld [vmem:[%s5169_s7 + $0x1f0] sm:$0xff] }
 0x15f   :  { %1270 = vmatprep.subr.mxu1 %v1178_v36  ;;  %v2688_v36 = vld [vmem:[%s5169_s7 + $0x2b0] sm:$0xff] }
 0x160   :  { %1271 = vmatpush1.msra.mxu1 %v1177_v37  ;;  %v1673_v37 = vld [vmem:[%s5169_s7 + $0x1e8] sm:$0xff] }
 0x161   :  { %1272 = vmatprep.subr.mxu1 %v1175_v38  ;;  %v2687_v38 = vld [vmem:[%s5169_s7 + $0x2a8] sm:$0xff] }
 0x162   :  { %1273 = vmatpush1.msra.mxu1 %v1174_v39  ;;  %v1672_v39 = vld [vmem:[%s5169_s7 + $0x1e0] sm:$0xff] }
 0x163   :  { %1274 = vmatprep.subr.mxu1 %v1172_v41  ;;  %v2686_v41 = vld [vmem:[%s5169_s7 + $0x2a0] sm:$0xff] }
 0x164   :  { %1275 = vmatpush1.msra.mxu1 %v1171_v42  ;;  %v1671_v42 = vld [vmem:[%s5169_s7 + $0x1d8] sm:$0xff] }
 0x165   :  { %1276 = vmatprep.subr.mxu1 %v1169_v43  ;;  %v2685_v43 = vld [vmem:[%s5169_s7 + $0x298] sm:$0xff] }
 0x166   :  { %1277 = vmatpush1.msra.mxu1 %v1168_v44  ;;  %v1670_v44 = vld [vmem:[%s5169_s7 + $0x1d0] sm:$0xff] }
 0x167   :  { %2656 = vmatmul.mubr.msk.f32.vlgmr.msra.gmra.mxu1 %vm608_vm3, %v3686_v18  ;;  %v1643_v18 = vld [vmem:[%s5169_s7 + $0xf8] sm:$0xff] }
 0x168   :  { %1316 = vmatprep.mubr.f32.mxu1 %v5175_v27  ;;  %1698 = vmatprep.subr.mxu1 %v1643_v18  ;;  %v2684_v18 = vld [vmem:[%s5169_s7 + $0x290] sm:$0xff] }
 0x16b   :  { %2657 = vmatmul.mubr.msk.f32.gmra.mxu1 %vm608_vm3, %v3702_v26  ;;  %v1642_v26 = vld [vmem:[%s5169_s7 + $0xf0] sm:$0xff] }
 0x16c   :  { %1322 = vmatprep.mubr.f32.mxu1 %v5175_v27  ;;  %1699 = vmatpush1.msra.mxu1 %v1642_v26  ;;  %v1669_v26 = vld [vmem:[%s5169_s7 + $0x1c8] sm:$0xff] }
 0x16f   :  { %2658 = vmatmul.mubr.msk.f32.gmra.mxu1 %vm608_vm3, %v3714_v32  ;;  %v1641_v32 = vld [vmem:[%s5169_s7 + $0xe8] sm:$0xff] }
 0x170   :  { %1328 = vmatprep.mubr.f32.mxu1 %v5175_v27  ;;  %1700 = vmatprep.subr.mxu1 %v1641_v32  ;;  %v2683_v32 = vld [vmem:[%s5169_s7 + $0x288] sm:$0xff] }
 0x173   :  { %2659 = vmatmul.mubr.msk.f32.gmra.mxu1 %vm608_vm3, %v3732_v40  ;;  %v1640_v40 = vld [vmem:[%s5169_s7 + $0xe0] sm:$0xff] }
 0x174   :  { %1334 = vmatprep.mubr.f32.mxu1 %v5175_v27  ;;  %1701 = vmatpush1.msra.mxu1 %v1640_v40  ;;  %v1668_v40 = vld [vmem:[%s5169_s7 + $0x1c0] sm:$0xff] }
 0x175   :  { %1702 = vmatprep.subr.mxu1 %v1639_v46  ;;  %v2682_v46 = vld [vmem:[%s5169_s7 + $0x280] sm:$0xff] }
 0x177   :  { %2660 = vmatmul.mubr.msk.f32.gmra.mxu1 %vm608_vm3, %v3745_v45  ;;  %v1638_v45 = vld [vmem:[%s5169_s7 + $0xd0] sm:$0xff] }
 0x178   :  { %1340 = vmatprep.mubr.f32.mxu1 %v5175_v27  ;;  %1703 = vmatpush1.msra.mxu1 %v1638_v45  ;;  %v1667_v45 = vld [vmem:[%s5169_s7 + $0x1b8] sm:$0xff] }
 0x179   :  { %1704 = vmatprep.subr.mxu1 %v1637_v47  ;;  %v2681_v47 = vld [vmem:[%s5169_s7 + $0x278] sm:$0xff] }
 0x17a   :  { %1705 = vmatpush1.msra.mxu1 %v1636_v48  ;;  %v1666_v48 = vld [vmem:[%s5169_s7 + $0x1b0] sm:$0xff] }
 0x17b   :  { %2661 = vmatmul.mubr.msk.f32.gmra.mxu1 %vm608_vm3, %v3761_v52  ;;  %1706 = vmatprep.subr.mxu1 %v1635_v49  ;;  %v1632_v52 = vld [vmem:[%s5169_s7 + $0xa0] sm:$0xff]  ;;  %v2680_v49 = vld [vmem:[%s5169_s7 + $0x270] sm:$0xff] }
 0x17c   :  { %1346 = vmatprep.mubr.f32.mxu1 %v5175_v27  ;;  %1707 = vmatpush1.msra.mxu1 %v1634_v50  ;;  %v1665_v50 = vld [vmem:[%s5169_s7 + $0x1a8] sm:$0xff] }
 0x17d   :  { %1708 = vmatprep.subr.mxu1 %v1633_v51  ;;  %v2679_v51 = vld [vmem:[%s5169_s7 + $0x268] sm:$0xff] }
 0x17e   :  { %1709 = vmatpush1.msra.mxu1 %v1632_v52  ;;  %v1664_v52 = vld [vmem:[%s5169_s7 + $0x1a0] sm:$0xff] }
 0x17f   :  { %2662 = vmatmul.mubr.msk.f32.gmra.mxu1 %vm608_vm3, %v3776_v58  ;;  %1710 = vmatprep.subr.mxu1 %v1631_v55  ;;  %v1629_v58 = vld [vmem:[%s5169_s7 + $0x88] sm:$0xff]  ;;  %v2678_v55 = vld [vmem:[%s5169_s7 + $0x260] sm:$0xff] }
 0x180   :  { %1352 = vmatprep.mubr.f32.mxu1 %v5175_v27  ;;  %1711 = vmatpush1.msra.mxu1 %v1630_v56  ;;  %v2741_v56 = vld [vmem:[%s5169_s7 + $0x458] sm:$0xff] }
 0x181   :  { %1712 = vmatprep.subr.mxu1 %v1629_v58  ;;  %v2740_v58 = vld [vmem:[%s5169_s7 + $0x450] sm:$0xff] }
 0x182   :  { %1713 = vmatpush1.msra.mxu1 %v1628_v60  ;;  %v2739_v60 = vld [vmem:[%s5169_s7 + $0x448] sm:$0xff] }
 0x183   :  { %2663 = vmatmul.mubr.msk.f32.gmra.mxu1 %vm608_vm3, %v3789_v62  ;;  %v2705_v62 = vld [vmem:[%s5169_s7 + $0x338] sm:$0xff]  ;;  %1714 = vmatprep.subr.mxu1 %v1627_v61  ;;  %v2738_v61 = vld [vmem:[%s5169_s7 + $0x440] sm:$0xff] }
 0x184   :  { %1358 = vmatprep.mubr.f32.mxu1 %v5175_v27  ;;  %1943 = vmatprep.subr.mxu0 %v2705_v62  ;;  %v1659_v62 = vld [vmem:[%s5169_s7 + $0x178] sm:$0xff] }
 0x185   :  { %1715 = vmatpush1.msra.mxu1 %v1626_v63  ;;  %1944 = vmatpush1.msra.mxu0 %v2704_v1  ;;  %v2737_v63 = vld [vmem:[%s5169_s7 + $0x438] sm:$0xff]  ;;  %v1658_v1 = vld [vmem:[%s5169_s7 + $0x170] sm:$0xff] }
 0x186   :  { %1716 = vmatprep.subr.mxu1 %v1625_v2  ;;  %1945 = vmatprep.subr.mxu0 %v2703_v3  ;;  %v2736_v2 = vld [vmem:[%s5169_s7 + $0x430] sm:$0xff]  ;;  %v1657_v3 = vld [vmem:[%s5169_s7 + $0x168] sm:$0xff] }
 0x187   :  { %2664 = vmatmul.mubr.msk.f32.gmra.mxu1 %vm608_vm3, %v3802_v0  ;;  %v1624_v0 = vld [vmem:[%s5169_s7 + $0x60] sm:$0xff]  ;;  %1946 = vmatpush1.msra.mxu0 %v2702_v4 }
 0x188   :  { %1364 = vmatprep.mubr.f32.mxu1 %v5175_v27  ;;  %1717 = vmatpush1.msra.mxu1 %v1624_v0  ;;  %v2735_v0 = vld [vmem:[%s5169_s7 + $0x428] sm:$0xff]  ;;  %v1656_v4 = vld [vmem:[%s5169_s7 + $0x160] sm:$0xff] }
 0x189   :  { %1718 = vmatprep.subr.mxu1 %v1623_v5  ;;  %1947 = vmatprep.subr.mxu0 %v2701_v6  ;;  %v2734_v5 = vld [vmem:[%s5169_s7 + $0x420] sm:$0xff]  ;;  %v1655_v6 = vld [vmem:[%s5169_s7 + $0x158] sm:$0xff] }
 0x18a   :  { %1719 = vmatpush1.msra.mxu1 %v1622_v7  ;;  %1948 = vmatpush1.msra.mxu0 %v2700_v8  ;;  %v2733_v7 = vld [vmem:[%s5169_s7 + $0x418] sm:$0xff]  ;;  %v1654_v8 = vld [vmem:[%s5169_s7 + $0x150] sm:$0xff] }
 0x18b   :  { %1365 = vmatmul.mubr.f32.gmra.mxu1 %v5175_v27  ;;  %1720 = vmatprep.subr.mxu1 %v1621_v9  ;;  %v2732_v9 = vld [vmem:[%s5169_s7 + $0x410] sm:$0xff]  ;;  %v1516_v27 = vld [vmem:[%s5170_s6] sm:$0x7] }
 0x18c   :  { %1949 = vmatprep.subr.mxu0 %v2699_v10  ;;  %1721 = vmatpush1.msra.mxu1 %v1620_v11  ;;  %v1653_v10 = vld [vmem:[%s5169_s7 + $0x148] sm:$0xff] }
 0x18d   :  { %1950 = vmatpush1.msra.mxu0 %v2698_v12  ;;  %1722 = vmatprep.subr.mxu1 %v1619_v14  ;;  %v2731_v11 = vld [vmem:[%s5169_s7 + $0x408] sm:$0xff]  ;;  %v1652_v12 = vld [vmem:[%s5169_s7 + $0x140] sm:$0xff] }
 0x18e   :  { %1951 = vmatprep.subr.mxu0 %v2697_v15  ;;  %1723 = vmatpush1.msra.mxu1 %v1618_v16  ;;  %v2730_v14 = vld [vmem:[%s5169_s7 + $0x400] sm:$0xff]  ;;  %v1651_v15 = vld [vmem:[%s5169_s7 + $0x138] sm:$0xff] }
 0x18f   :  { %1952 = vmatpush1.msra.mxu0 %v2696_v17  ;;  %1724 = vmatprep.subr.mxu1 %v1617_v19  ;;  %v2729_v16 = vld [vmem:[%s5169_s7 + $0x3f8] sm:$0xff]  ;;  %v1650_v17 = vld [vmem:[%s5169_s7 + $0x130] sm:$0xff] }
 0x190   :  { %1953 = vmatprep.subr.mxu0 %v2695_v20  ;;  %1725 = vmatpush1.msra.mxu1 %v1616_v13  ;;  %v2728_v19 = vld [vmem:[%s5169_s7 + $0x3f0] sm:$0xff]  ;;  %v1649_v20 = vld [vmem:[%s5169_s7 + $0x128] sm:$0xff] }
 0x191   :  { %1954 = vmatpush1.msra.mxu0 %v2694_v21  ;;  %1726 = vmatprep.subr.mxu1 %v1615_v22  ;;  %v2727_v13 = vld [vmem:[%s5169_s7 + $0x3e8] sm:$0xff]  ;;  %v1648_v21 = vld [vmem:[%s5169_s7 + $0x120] sm:$0xff] }
 0x192   :  { %1955 = vmatprep.subr.mxu0 %v2693_v23  ;;  %1727 = vmatpush1.msra.mxu1 %v1614_v24  ;;  %v2726_v22 = vld [vmem:[%s5169_s7 + $0x3e0] sm:$0xff]  ;;  %v1647_v23 = vld [vmem:[%s5169_s7 + $0x118] sm:$0xff] }
 0x193   :  { %1956 = vmatpush1.msra.mxu0 %v2692_v25  ;;  %1728 = vmatprep.subr.mxu1 %v1613_v28  ;;  %v2725_v24 = vld [vmem:[%s5169_s7 + $0x3d8] sm:$0xff]  ;;  %v1646_v25 = vld [vmem:[%s5169_s7 + $0x110] sm:$0xff] }
 0x194   :  { %1957 = vmatprep.subr.mxu0 %v2691_v29  ;;  %1729 = vmatpush1.msra.mxu1 %v1612_v30  ;;  %v2724_v28 = vld [vmem:[%s5169_s7 + $0x3d0] sm:$0xff]  ;;  %v1645_v29 = vld [vmem:[%s5169_s7 + $0x108] sm:$0xff] }
 0x195   :  { %1958 = vmatpush1.msra.mxu0 %v2690_v31  ;;  %1730 = vmatprep.subr.mxu1 %v1675_v33  ;;  %v2723_v30 = vld [vmem:[%s5169_s7 + $0x3c8] sm:$0xff]  ;;  %v1644_v31 = vld [vmem:[%s5169_s7 + $0x100] sm:$0xff] }
 0x196   :  { %1959 = vmatprep.subr.mxu0 %v2689_v34  ;;  %1731 = vmatpush2.msra.mxu1 %v1674_v35  ;;  %v2722_v33 = vld [vmem:[%s5169_s7 + $0x3c0] sm:$0xff]  ;;  %v1687_v34 = vld [vmem:[%s5169_s7 + $0x258] sm:$0xf] }
 0x197   :  { %1960 = vmatpush1.msra.mxu0 %v2688_v36  ;;  %1732 = vmatprep.subr.mxu1 %v1673_v37  ;;  %v2721_v35 = vld [vmem:[%s5169_s7 + $0x3b8] sm:$0xff]  ;;  %v2720_v36 = vld [vmem:[%s5169_s7 + $0x3b0] sm:$0xff]  ;;  %v2719_v37 = vld [vmem:[%s5169_s7 + $0x3a8] sm:$0xff] }
 0x198   :  { %1961 = vmatprep.subr.mxu0 %v2687_v38  ;;  %1733 = vmatpush2.msra.mxu1 %v1672_v39  ;;  %v2718_v38 = vld [vmem:[%s5169_s7 + $0x3a0] sm:$0xff]  ;;  %v2717_v39 = vld [vmem:[%s5169_s7 + $0x398] sm:$0xff] }
 0x199   :  { %1962 = vmatpush1.msra.mxu0 %v2686_v41  ;;  %1734 = vmatprep.subr.mxu1 %v1671_v42  ;;  %v2716_v41 = vld [vmem:[%s5169_s7 + $0x390] sm:$0xff]  ;;  %v2715_v42 = vld [vmem:[%s5169_s7 + $0x388] sm:$0xff] }
 0x19a   :  { %1963 = vmatprep.subr.mxu0 %v2685_v43  ;;  %1735 = vmatpush2.msra.mxu1 %v1670_v44  ;;  %v2714_v43 = vld [vmem:[%s5169_s7 + $0x380] sm:$0xff]  ;;  %v2713_v44 = vld [vmem:[%s5169_s7 + $0x378] sm:$0xff] }
 0x19b   :  { %1964 = vmatpush1.msra.mxu0 %v2684_v18  ;;  %1736 = vmatprep.subr.mxu1 %v1669_v26  ;;  %v2712_v18 = vld [vmem:[%s5169_s7 + $0x370] sm:$0xff]  ;;  %v2711_v26 = vld [vmem:[%s5169_s7 + $0x368] sm:$0xff] }
 0x19c   :  { %1965 = vmatprep.subr.mxu0 %v2683_v32  ;;  %1737 = vmatpush2.msra.mxu1 %v1668_v40  ;;  %v2710_v32 = vld [vmem:[%s5169_s7 + $0x360] sm:$0xff]  ;;  %v2753_v40 = vld [vmem:[%s5169_s7 + $0x4b8] sm:$0xf] }
 0x19d   :  { %1966 = vmatpush1.msra.mxu0 %v2682_v46  ;;  %1738 = vmatprep.subr.mxu1 %v1667_v45  ;;  %v4403_v46 = vpop.f32.mrf.mxu0 }
 0x19e   :  { %1967 = vmatprep.subr.mxu0 %v2681_v47  ;;  %1739 = vmatpush2.msra.mxu1 %v1666_v48 }
 0x19f   :  { %1968 = vmatpush1.msra.mxu0 %v2680_v49  ;;  %1740 = vmatprep.subr.mxu1 %v1665_v50  ;;  %v4406_v45 = vpop.f32.mrf.mxu0 }
 0x1a0   :  { %1969 = vmatprep.subr.mxu0 %v2679_v51  ;;  %1741 = vmatpush2.msra.mxu1 %v1664_v52 }
 0x1a1   :  { %1970 = vmatpush1.msra.mxu0 %v2678_v55  ;;  %1742 = vmatprep.subr.mxu1 %v1663_v54 }
 0x1a2   :  { %1971 = vmatprep.subr.mxu0 %v2741_v56  ;;  %1743 = vmatpush2.msra.mxu1 %v1662_v57 }
 0x1a3   :  { %1972 = vmatpush2.msra.mxu0 %v2740_v58  ;;  %1744 = vmatprep.subr.mxu1 %v1661_v59 }
 0x1a4   :  { %1973 = vmatprep.subr.mxu0 %v2739_v60  ;;  %1745 = vmatpush2.msra.mxu1 %v1660_v53 }
 0x1a5   :  { %1974 = vmatpush2.msra.mxu0 %v2738_v61  ;;  %1746 = vmatprep.subr.mxu1 %v1659_v62 }
 0x1a6   :  { %1975 = vmatprep.subr.mxu0 %v2737_v63  ;;  %1747 = vmatpush2.msra.mxu1 %v1658_v1 }
 0x1a7   :  { %1976 = vmatpush2.msra.mxu0 %v2736_v2  ;;  %1748 = vmatprep.subr.mxu1 %v1657_v3 }
 0x1a8   :  { %1977 = vmatprep.subr.mxu0 %v2735_v0  ;;  %1749 = vmatpush2.msra.mxu1 %v1656_v4 }
 0x1a9   :  { %1978 = vmatpush2.msra.mxu0 %v2734_v5  ;;  %1750 = vmatprep.subr.mxu1 %v1655_v6 }
 0x1aa   :  { %1979 = vmatprep.subr.mxu0 %v2733_v7  ;;  %1751 = vmatpush2.msra.mxu1 %v1654_v8 }
 0x1ab   :  { %1980 = vmatpush2.msra.mxu0 %v2732_v9  ;;  %1752 = vmatprep.subr.mxu1 %v1653_v10 }
 0x1ac   :  { %1981 = vmatprep.subr.mxu0 %v2731_v11  ;;  %1753 = vmatpush2.msra.mxu1 %v1652_v12 }
 0x1ad   :  { %1982 = vmatpush2.msra.mxu0 %v2730_v14  ;;  %1754 = vmatprep.subr.mxu1 %v1651_v15 }
 0x1ae   :  { %1983 = vmatprep.subr.mxu0 %v2729_v16  ;;  %1755 = vmatpush2.msra.mxu1 %v1650_v17 }
 0x1af   :  { %1984 = vmatpush2.msra.mxu0 %v2728_v19  ;;  %1756 = vmatprep.subr.mxu1 %v1649_v20 }
 0x1b0   :  { %1985 = vmatprep.subr.mxu0 %v2727_v13  ;;  %1757 = vmatpush2.msra.mxu1 %v1648_v21 }
 0x1b1   :  { %1986 = vmatpush2.msra.mxu0 %v2726_v22  ;;  %1758 = vmatprep.subr.mxu1 %v1647_v23 }
 0x1b2   :  { %1987 = vmatprep.subr.mxu0 %v2725_v24  ;;  %1759 = vmatpush2.msra.mxu1 %v1646_v25 }
 0x1b3   :  { %1988 = vmatpush2.msra.mxu0 %v2724_v28  ;;  %1760 = vmatprep.subr.mxu1 %v1645_v29 }
 0x1b4   :  { %1989 = vmatprep.subr.mxu0 %v2723_v30  ;;  %1761 = vmatpush2.msra.mxu1 %v1644_v31 }
 0x1b5   :  { %1990 = vmatpush2.msra.mxu0 %v2722_v33  ;;  %2675 = vmatprep.subr.msk.mxu1 %vm639_vm2, %v1687_v34 }
 0x1b6   :  { %1991 = vmatprep.subr.mxu0 %v2721_v35 }
 0x1b7   :  { %1992 = vmatpush2.msra.mxu0 %v2720_v36 }
 0x1b8   :  { %1993 = vmatprep.subr.mxu0 %v2719_v37 }
 0x1b9   :  { %1994 = vmatpush2.msra.mxu0 %v2718_v38 }
 0x1ba   :  { %1995 = vmatprep.subr.mxu0 %v2717_v39 }
 0x1bb   :  { %1996 = vmatpush2.msra.mxu0 %v2716_v41 }
 0x1bc   :  { %1997 = vmatprep.subr.mxu0 %v2715_v42 }
 0x1bd   :  { %1998 = vmatpush2.msra.mxu0 %v2714_v43 }
 0x1be   :  { %1999 = vmatprep.subr.mxu0 %v2713_v44 }
 0x1bf   :  { %2000 = vmatpush2.msra.mxu0 %v2712_v18 }
 0x1c0   :  { %2001 = vmatprep.subr.mxu0 %v2711_v26 }
 0x1c1   :  { %2002 = vmatpush2.msra.mxu0 %v2710_v32 }
 0x1c2   :  { %2754 = vmatprep.subr.msk.mxu0 %vm639_vm2, %v2753_v40  ;;  %v1518_v40 = vlaneseq }
 0x1cb   :  { %v4408_v47 = vpop.f32.mrf.mxu1  ;;  %v4410_v48 = vpop.f32.mrf.mxu0 }
 0x1cd   :  { %v4412_v49 = vpop.f32.mrf.mxu1  ;;  %v4414_v50 = vpop.f32.mrf.mxu0 }
 0x1cf   :  { %v4416_v51 = vpop.f32.mrf.mxu1  ;;  %v4418_v52 = vpop.f32.mrf.mxu0 }
 0x1d1   :  { %v4420_v55 = vpop.f32.mrf.mxu1  ;;  %v4422_v54 = vpop.f32.mrf.mxu0 }
 0x1d3   :  { %v4424_v56 = vpop.f32.mrf.mxu1  ;;  %v4426_v57 = vpop.f32.mrf.mxu0 }
 0x1d5   :  { %v4428_v58 = vpop.f32.mrf.mxu1  ;;  %v4430_v59 = vpop.f32.mrf.mxu0 }
 0x1d7   :  { %v4432_v60 = vpop.f32.mrf.mxu1  ;;  %v4434_v53 = vpop.f32.mrf.mxu0 }
 0x1d9   :  { %v4436_v61 = vpop.f32.mrf.mxu1  ;;  %v4438_v62 = vpop.f32.mrf.mxu0 }
 0x1db   :  { %v4440_v63 = vpop.f32.mrf.mxu1  ;;  %v1024_v1 = vpop.f32.mrf.mxu0 }
 0x1dd   :  { %v4442_v2 = vpop.f32.mrf.mxu1  ;;  %v4444_v3 = vpop.f32.mrf.mxu0 }
 0x1df   :  { %v745_v0 = vpop.f32.mrf.mxu1  ;;  %v1030_v4 = vpop.f32.mrf.mxu0 }
 0x1e0   :  { %v4446_v5 = vadd.f32 %v1024_v1, %v745_v0 }
 0x1e1   :  { %v4448_v6 = vpop.f32.mrf.mxu1  ;;  %v4450_v7 = vpop.f32.mrf.mxu0 }
 0x1e2   :  { %5177 = vst [vmem:[#allocation3_spill] sm:$0xff] %v4450_v7 }
 0x1e3   :  { %v751_v8 = vpop.f32.mrf.mxu1  ;;  %v1036_v9 = vpop.f32.mrf.mxu0 }
 0x1e4   :  { %v4452_v10 = vadd.f32 %v1030_v4, %v751_v8  ;;  %v1519_v8 = vshrl.u32 %v1518_v40, 7 }
 0x1e5   :  { %v4454_v11 = vpop.f32.mrf.mxu1  ;;  %v4456_v12 = vpop.f32.mrf.mxu0 }
 0x1e6   :  { %5178 = vst [vmem:[#allocation4_spill] sm:$0xff] %v4452_v10  ;;  %5179 = vst [vmem:[#allocation5_spill] sm:$0xff] %v4454_v11 }
 0x1e7   :  { %5180 = vst [vmem:[#allocation6_spill] sm:$0xff] %v4456_v12  ;;  %v757_v14 = vpop.f32.mrf.mxu1  ;;  %v1042_v15 = vpop.f32.mrf.mxu0 }
 0x1e8   :  { %v4458_v16 = vadd.f32 %v1036_v9, %v757_v14 }
 0x1e9   :  { %v4460_v17 = vpop.f32.mrf.mxu1  ;;  %v4462_v19 = vpop.f32.mrf.mxu0 }
 0x1ea   :  { %5181 = vst [vmem:[#allocation7_spill] sm:$0xff] %v4458_v16  ;;  %5182 = vst [vmem:[#allocation8_spill] sm:$0xff] %v4460_v17 }
 0x1eb   :  { %5183 = vst [vmem:[#allocation9_spill] sm:$0xff] %v4462_v19  ;;  %v763_v20 = vpop.f32.mrf.mxu1  ;;  %v1048_v22 = vpop.f32.mrf.mxu0 }
 0x1ec   :  { %v4464_v13 = vadd.f32 %v1042_v15, %v763_v20 }
 0x1ed   :  { %v4466_v21 = vpop.f32.mrf.mxu1  ;;  %v4478_v31 = vpop.f32.mrf.mxu0 }
 0x1ee   :  { %5184 = vst [vmem:[#allocation10_spill] sm:$0xff] %v4464_v13  ;;  %5185 = vst [vmem:[#allocation11_spill] sm:$0xff] %v4466_v21 }
 0x1ef   :  { %v769_v23 = vpop.f32.mrf.mxu1  ;;  %5188 = vst [vmem:[#allocation14_spill] sm:$0xff] %v4478_v31  ;;  %v4482_v35 = vpop.f32.mrf.mxu0 }
 0x1f0   :  { %v4468_v24 = vadd.f32 %v1048_v22, %v769_v23  ;;  %v1528_v22 = vsub.s32 2, %v1519_v8 }
 0x1f1   :  { %v4470_v25 = vpop.f32.mrf.mxu1  ;;  %v4486_v38 = vpop.f32.mrf.mxu0 }
 0x1f2   :  { %5186 = vst [vmem:[#allocation12_spill] sm:$0xff] %v4468_v24  ;;  %5187 = vst [vmem:[#allocation13_spill] sm:$0xff] %v4470_v25  ;;  %v4507_v21 = vrot.slane %v1516_v27, %v1528_v22 }
 0x1f3   :  { %v4472_v28 = vpop.f32.mrf.mxu1  ;;  %v4488_v41 = vpop.f32.mrf.mxu0 }
 0x1f4   :  { %5189 = vst [vmem:[#allocation15_spill] sm:$0xff] %v4488_v41 }
 0x1f5   :  { %v4474_v29 = vpop.f32.mrf.mxu1  ;;  %v4490_v43 = vpop.f32.mrf.mxu0 }
 0x1f7   :  { %v4476_v30 = vpop.f32.mrf.mxu1 }
 0x1f8   :  { %v3212_v18 = vpop.f32.mrf.mxu0 }
 0x1f9   :  { %v4480_v33 = vpop.f32.mrf.mxu1 }
 0x1fa   :  { %v4496_v1 = vpop.f32.mrf.mxu0 }
 0x1fb   :  { %v3130_v34 = vpop.f32.mrf.mxu1  ;;  %5190 = vst [vmem:[#allocation16_spill] sm:$0xff] %v4496_v1 }
 0x1fc   :  { %v3215_v9 = vpop.f32.mrf.mxu0 }
 0x1fd   :  { %v4484_v36 = vpop.f32.mrf.mxu1 }
 0x1fe   :  { %v1467_v23 = vpop.f32.mrf.mxu0 }
 0x1ff   :  { %v3133_v37 = vpop.f32.mrf.mxu1 }
 0x201   :  { %v870_v39 = vpop.f32.mrf.mxu1  ;;  %v3218_v19 = vpop.f32.mrf.mxu0 }
 0x203   :  { %v3136_v42 = vpop.f32.mrf.mxu1  ;;  %v1477_v41 = vpop.f32.mrf.mxu0 }
 0x205   :  { %v880_v44 = vpop.f32.mrf.mxu1 }
 0x20d   :  { %v4492_v26 = vpop.f32.mrf.mxu1 }
 0x20f   :  { %v4494_v32 = vpop.f32.mrf.mxu1 }
 0x211   :  { %v4498_v0 = vpop.f32.mrf.mxu1 }
 0x213   :  { %v4500_v4 = vpop.f32.mrf.mxu1 }
 0x215   :  { %v3171_v14 = vpop.f32.mrf.mxu1 }
 0x216   :  { %v1145_v15 = vadd.f32 %v3171_v14, %v3130_v34 }
 0x217   :  { %v4502_v20 = vpop.f32.mrf.mxu1 }
 0x218   :  { %v1503_v31 = vadd.f32 %v3212_v18, %v1145_v15 }
 0x219   :  { %v3174_v24 = vpop.f32.mrf.mxu1 }
 0x21a   :  { %v1155_v25 = vadd.f32 %v3174_v24, %v3133_v37  ;;  %v1550_v34 = vadd.f32 %v4507_v21, %v1503_v31  ;;  %v4514_v31 = vsub.s32 0, %v1519_v8 }
 0x21b   :  { %v1149_v13 = vpop.f32.mrf.mxu1 }
 0x21c   :  { %v1509_v16 = vadd.f32 %v3215_v9, %v1155_v25  ;;  %v1150_v40 = vadd.f32 %v1149_v13, %v870_v39  ;;  %v1580_v24 = vmax.f32 %v1550_v34, 0.0  ;;  %v1007_v34 = vadd.f32 %v4418_v52, %v4424_v56 }
 0x21d   :  { %v3177_v12 = vpop.f32.mrf.mxu1  ;;  %v1120_v52 = vadd.f32 %v4494_v32, %v4474_v29  ;;  %v1686_v32 = vld [vmem:[%s5169_s7 + $0x250] sm:$0xf] }
 0x21e   :  { %v1506_v14 = vadd.f32 %v1467_v23, %v1150_v40  ;;  %v1165_v17 = vadd.f32 %v3177_v12, %v3136_v42  ;;  %v1556_v10 = vadd.f32 %v4507_v21, %v1509_v16  ;;  %v4516_v12 = vsub.s32 1, %v1519_v8 }
 0x21f   :  { %v1159_v1 = vpop.f32.mrf.mxu1  ;;  %v995_v16 = vadd.f32 %v4403_v46, %v4408_v47  ;;  %v1001_v8 = vadd.f32 %v4410_v48, %v4416_v51  ;;  %v1003_v23 = vadd.f32 %v4414_v50, %v4420_v55 }
 0x220   :  { %v1553_v7 = vadd.f32 %v4507_v21, %v1506_v14  ;;  %v1160_v11 = vadd.f32 %v1159_v1, %v880_v44  ;;  %v1515_v18 = vadd.f32 %v3218_v19, %v1165_v17  ;;  %v1586_v25 = vmax.f32 %v1556_v10, 0.0 }
 0x221   :  { %v4532_v46 = vrot.slane %v1516_v27, %v4516_v12 }
 0x222   :  { %v1583_v37 = vmax.f32 %v1553_v7, 0.0  ;;  %v1562_v15 = vadd.f32 %v4507_v21, %v1515_v18  ;;  %v1512_v22 = vadd.f32 %v1477_v41, %v1160_v11  ;;  %v997_v7 = vadd.f32 %v4406_v45, %v4412_v49 }
 0x223   :  { %v4527_v41 = vrot.slane %v1516_v27, %v4514_v31  ;;  %v1009_v27 = vadd.f32 %v4422_v54, %v4428_v58  ;;  %v1125_v54 = vadd.f32 %v4492_v26, %v4472_v28  ;;  %v1019_v28 = vadd.f32 %v4434_v53, %v4440_v63 }
 0x224   :  { %v1604_v13 = vmax.f32 %v1580_v24, %v1583_v37  ;;  %v1559_v39 = vadd.f32 %v4507_v21, %v1512_v22  ;;  %v1592_v44 = vmax.f32 %v1562_v15, 0.0  ;;  %v1013_v15 = vadd.f32 %v4426_v57, %v4432_v60 }
 0x225   :  { %v1488_v57 = vadd.f32 %v4486_v38, %v1120_v52  ;;  %v1491_v38 = vadd.f32 %v4482_v35, %v1125_v54  ;;  %v1677_v54 = vld [vmem:[%s5169_s7 + $0x208] sm:$0xff] }
 0x226   :  { %v4520_v42 = vmax.f32 %v1604_v13, %v1586_v25  ;;  %v1589_v17 = vmax.f32 %v1559_v39, 0.0 }
 0x227   :  { %v1312_v19 = vpop.f32.mrf.mxu1 }
 0x228   :  { %v4524_v11 = vmax.f32 %v1589_v17, %v1592_v44  ;;  %v1486_v10 = vadd.f32 %v1312_v19, %v995_v16  ;;  %v1015_v16 = vadd.f32 %v4430_v59, %v4436_v61  ;;  %v1685_v59 = vld [vmem:[%s5169_s7 + $0x248] sm:$0xff]  ;;  %v1021_v61 = vadd.f32 %v4438_v62, %v4442_v2 }
 0x229   :  { %v1314_v1 = vpop.f32.mrf.mxu1  ;;  %v5191_v62 = vmov 0.0   ;;  %v1535_v2 = vadd.f32 %v4507_v21, %v1488_v57 }
 0x22a   :  { %v1487_v9 = vadd.f32 %v1314_v1, %v997_v7  ;;  %v1533_v45 = vadd.f32 %v4527_v41, %v1486_v10  ;;  %v1684_v1 = vld [vmem:[%s5169_s7 + $0x240] sm:$0xff] }
 0x22b   :  { %v1318_v47 = vpop.f32.mrf.mxu1 }
 0x22c   :  { %v1489_v49 = vadd.f32 %v1318_v47, %v1001_v8  ;;  %v1534_v14 = vadd.f32 %v4532_v46, %v1487_v9  ;;  %v1563_v24 = vmax.f32 %v1533_v45, 0.0  ;;  %v1683_v47 = vld [vmem:[%s5169_s7 + $0x238] sm:$0xff]  ;;  %v1682_v45 = vld [vmem:[%s5169_s7 + $0x230] sm:$0xff] }
 0x22d   :  { %v1320_v40 = vpop.f32.mrf.mxu1 }
 0x22e   :  { %v1536_v18 = vadd.f32 %v4527_v41, %v1489_v49  ;;  %v1490_v48 = vadd.f32 %v1320_v40, %v1003_v23  ;;  %v1564_v22 = vmax.f32 %v1534_v14, 0.0 }
 0x22f   :  { %v1324_v51 = vpop.f32.mrf.mxu1 }
 0x230   :  { %v1566_v37 = vmax.f32 %v1536_v18, 0.0  ;;  %v1537_v50 = vadd.f32 %v4532_v46, %v1490_v48  ;;  %v1492_v55 = vadd.f32 %v1324_v51, %v1007_v34  ;;  %v1681_v18 = vld [vmem:[%s5169_s7 + $0x228] sm:$0xff]  ;;  %v1027_v48 = vadd.f32 %v4444_v3, %v4448_v6  ;;  %v1679_v3 = vld [vmem:[%s5169_s7 + $0x218] sm:$0xff] }
 0x231   :  { %v1326_v56 = vpop.f32.mrf.mxu1  ;;  %v1130_v51 = vadd.f32 %v4500_v4, %v4480_v33  ;;  %v1565_v6 = vmax.f32 %v1535_v2, 0.0  ;;  %v1135_v33 = vadd.f32 %v4498_v0, %v4476_v30  ;;  %v1140_v4 = vadd.f32 %v4502_v20, %v4484_v36  ;;  %v1676_v20 = vld [vmem:[%s5169_s7 + $0x200] sm:$0xff] }
 0x232   :  { %v1593_v25 = vmax.f32 %v1563_v24, %v1566_v37  ;;  %v1567_v13 = vmax.f32 %v1537_v50, 0.0  ;;  %v1493_v39 = vadd.f32 %v1326_v56, %v1009_v27  ;;  %v1539_v44 = vadd.f32 %v4527_v41, %v1492_v55  ;;  %v1680_v37 = vld [vmem:[%s5169_s7 + $0x220] sm:$0xff] }
 0x233   :  { %v1330_v58 = vpop.f32.mrf.mxu1  ;;  %v1538_v27 = vadd.f32 %v4507_v21, %v1491_v38  ;;  %v1494_v0 = vadd.f32 %v4490_v43, %v1130_v51  ;;  %v5195_v43 = vld [vmem:[#allocation15_spill] sm:$0xff] }
 0x234   :  { %v1495_v17 = vadd.f32 %v1330_v58, %v1013_v15  ;;  %v1594_v19 = vmax.f32 %v1564_v22, %v1567_v13  ;;  %v1540_v60 = vadd.f32 %v4532_v46, %v1493_v39  ;;  %v1569_v53 = vmax.f32 %v1539_v44, 0.0  ;;  %v1678_v22 = vld [vmem:[%s5169_s7 + $0x210] sm:$0xff] }
 0x235   :  { %v1332_v29 = vpop.f32.mrf.mxu1  ;;  %v1568_v30 = vmax.f32 %v1538_v27, 0.0  ;;  %v5192_v58 = vld [vmem:[#allocation5_spill] sm:$0xff] }
 0x236   :  { %v1542_v26 = vadd.f32 %v4527_v41, %v1495_v17  ;;  %v1496_v7 = vadd.f32 %v1332_v29, %v1015_v16  ;;  %1762 = vmatprep.mubr.f32.mxu1 %v1594_v19  ;;  %v1570_v35 = vmax.f32 %v1540_v60, 0.0  ;;  %v5193_v16 = vld [vmem:[#allocation3_spill] sm:$0xff]  ;;  %v5194_v17 = vld [vmem:[#allocation4_spill] sm:$0xff]  ;;  %v2788_v60 = vld [vmem:[%s5169_s7 + $0x5b8] sm:$0xff] }
 0x237   :  { %v1336_v10 = vpop.f32.mrf.mxu1  ;;  %1763 = vmatmul.mubr.f32.vlgmr.msra.gmra.mxu1 %v1593_v25  ;;  %v1033_v44 = vadd.f32 %v5193_v16, %v5192_v58  ;;  %v1595_v29 = vmax.f32 %v1565_v6, %v1568_v30  ;;  %v2746_v58 = vld [vmem:[%s5169_s7 + $0x480] sm:$0xff]  ;;  %v2780_v16 = vld [vmem:[%s5169_s7 + $0x578] sm:$0xff] }
 0x238   :  { %v1572_v63 = vmax.f32 %v1542_v26, 0.0  ;;  %v1543_v8 = vadd.f32 %v4532_v46, %v1496_v7  ;;  %v1498_v9 = vadd.f32 %v1336_v10, %v1019_v28  ;;  %2676 = vmatpush1.msk.msra.mxu1 %vm639_vm2, %v1686_v32  ;;  %1833 = vmatprep.mubr.f32.mxu1 %v5191_v62  ;;  %v1497_v32 = vadd.f32 %v5195_v43, %v1135_v33  ;;  %v5196_v28 = vld [vmem:[#allocation16_spill] sm:$0xff] }
 0x239   :  { %1791 = vmatprep.subr.mxu1 %v1685_v59  ;;  %v1338_v23 = vpop.f32.mrf.mxu1  ;;  %v1500_v26 = vadd.f32 %v5196_v28, %v1140_v4  ;;  %v2782_v33 = vld [vmem:[%s5169_s7 + $0x588] sm:$0xff] }
 0x23a   :  { %v1596_v49 = vmax.f32 %v1569_v53, %v1572_v63  ;;  %v1573_v40 = vmax.f32 %v1543_v8, 0.0  ;;  %v1545_v34 = vadd.f32 %v4527_v41, %v1498_v9  ;;  %v1499_v14 = vadd.f32 %v1338_v23, %v1021_v61  ;;  %1792 = vmatpush1.msra.mxu1 %v1684_v1  ;;  %v2787_v61 = vld [vmem:[%s5169_s7 + $0x5b0] sm:$0xff]  ;;  %v2786_v53 = vld [vmem:[%s5169_s7 + $0x5a8] sm:$0xff]  ;;  %v5198_v8 = vld [vmem:[#allocation6_spill] sm:$0xff] }
 0x23b   :  { %1793 = vmatprep.subr.mxu1 %v1683_v47  ;;  %v1342_v24 = vpop.f32.mrf.mxu1  ;;  %v2752_v1 = vld [vmem:[%s5169_s7 + $0x4b0] sm:$0xf]  ;;  %v1541_v47 = vadd.f32 %v4507_v21, %v1494_v0  ;;  %v2785_v23 = vld [vmem:[%s5169_s7 + $0x5a0] sm:$0xff]  ;;  %v1544_v27 = vadd.f32 %v4507_v21, %v1497_v32  ;;  %v1547_v51 = vadd.f32 %v4507_v21, %v1500_v26 }
 0x23c   :  { %v1597_v50 = vmax.f32 %v1570_v35, %v1573_v40  ;;  %v1575_v55 = vmax.f32 %v1545_v34, 0.0  ;;  %v1546_v15 = vadd.f32 %v4532_v46, %v1499_v14  ;;  %v1501_v52 = vadd.f32 %v1342_v24, %v4446_v5  ;;  %1794 = vmatpush1.msra.mxu1 %v1682_v45  ;;  %v5197_v63 = vld [vmem:[#allocation8_spill] sm:$0xff]  ;;  %v5199_v34 = vld [vmem:[#allocation7_spill] sm:$0xff] }
 0x23d   :  { %1795 = vmatprep.subr.mxu1 %v1681_v18  ;;  %v1344_v56 = vpop.f32.mrf.mxu1  ;;  %v1039_v9 = vadd.f32 %v5198_v8, %v5197_v63  ;;  %v2751_v35 = vld [vmem:[%s5169_s7 + $0x4a8] sm:$0xff]  ;;  %v2750_v18 = vld [vmem:[%s5169_s7 + $0x4a0] sm:$0xff]  ;;  %v2748_v21 = vld [vmem:[%s5169_s7 + $0x490] sm:$0xff] }
 0x23e   :  { %v1599_v25 = vmax.f32 %v1596_v49, %v1575_v55  ;;  %v1576_v5 = vmax.f32 %v1546_v15, 0.0  ;;  %v1548_v13 = vadd.f32 %v4527_v41, %v1501_v52  ;;  %v1502_v39 = vadd.f32 %v1344_v56, %v1027_v48  ;;  %1796 = vmatpush1.msra.mxu1 %v1680_v37  ;;  %v2784_v48 = vld [vmem:[%s5169_s7 + $0x598] sm:$0xff]  ;;  %v2783_v55 = vld [vmem:[%s5169_s7 + $0x590] sm:$0xff]  ;;  %v5200_v4 = vld [vmem:[#allocation11_spill] sm:$0xff] }
 0x23f   :  { %1797 = vmatprep.subr.mxu1 %v1679_v3  ;;  %v1348_v36 = vpop.f32.mrf.mxu1  ;;  %v5201_v56 = vld [vmem:[#allocation9_spill] sm:$0xff]  ;;  %v5205_v63 = vld [vmem:[#allocation12_spill] sm:$0xff] }
 0x240   :  { %v1504_v19 = vadd.f32 %v1348_v36, %v5194_v17  ;;  %1798 = vmatpush1.msra.mxu1 %v1678_v22  ;;  %v1600_v57 = vmax.f32 %v1597_v50, %v1576_v5  ;;  %v1549_v7 = vadd.f32 %v4532_v46, %v1502_v39  ;;  %v1578_v45 = vmax.f32 %v1548_v13, 0.0  ;;  %v2749_v50 = vld [vmem:[%s5169_s7 + $0x498] sm:$0xff]  ;;  %v2747_v13 = vld [vmem:[%s5169_s7 + $0x488] sm:$0xff]  ;;  %v2781_v39 = vld [vmem:[%s5169_s7 + $0x580] sm:$0xff] }
 0x241   :  { %1799 = vmatprep.subr.mxu1 %v1677_v54  ;;  %v1350_v59 = vpop.f32.mrf.mxu1  ;;  %v1045_v22 = vadd.f32 %v5201_v56, %v5200_v4  ;;  %v5202_v36 = vld [vmem:[#allocation10_spill] sm:$0xff]  ;;  %v1577_v17 = vmax.f32 %v1547_v51, 0.0  ;;  %v2744_v26 = vld [vmem:[%s5169_s7 + $0x470] sm:$0xff]  ;;  %v2770_v4 = vld [vmem:[%s5169_s7 + $0x528] sm:$0xff] }
 0x242   :  { %v1551_v38 = vadd.f32 %v4527_v41, %v1504_v19  ;;  %v1505_v10 = vadd.f32 %v1350_v59, %v1033_v44  ;;  %1800 = vmatpush1.msra.mxu1 %v1676_v20  ;;  %2003 = vmatprep.mubr.f32.mxu0 %v1600_v57  ;;  %v1579_v24 = vmax.f32 %v1549_v7, 0.0  ;;  %v1574_v44 = vmax.f32 %v1544_v27, 0.0  ;;  %v2745_v57 = vld [vmem:[%s5169_s7 + $0x478] sm:$0xff]  ;;  %v2778_v7 = vld [vmem:[%s5169_s7 + $0x568] sm:$0xff] }
 0x243   :  { %2677 = vmatmul.mubr.msk.f32.vlgmr.msra.gmra.mxu1 %vm1688_vm4, %v1595_v29  ;;  %2169 = vmatprep.subr.mxu1 %v2788_v60  ;;  %v1354_v2 = vpop.f32.mrf.mxu1  ;;  %v2779_v60 = vld [vmem:[%s5169_s7 + $0x570] sm:$0xff]  ;;  %v2826_v56 = vld [vmem:[%s5169_s7 + $0x6e8] sm:$0xff] }
 0x244   :  { %v1581_v49 = vmax.f32 %v1551_v38, 0.0  ;;  %v1552_v40 = vadd.f32 %v4532_v46, %v1505_v10  ;;  %v1507_v14 = vadd.f32 %v1354_v2, %v5199_v34  ;;  %2004 = vmatmul.mubr.f32.vlgmr.msra.gmra.mxu0 %v1599_v25  ;;  %2170 = vmatpush1.msra.mxu1 %v2787_v61  ;;  %v1571_v25 = vmax.f32 %v1541_v47, 0.0  ;;  %v2743_v38 = vld [vmem:[%s5169_s7 + $0x468] sm:$0xff]  ;;  %v5203_v10 = vld [vmem:[#allocation13_spill] sm:$0xff]  ;;  %v2777_v47 = vld [vmem:[%s5169_s7 + $0x560] sm:$0xff] }
 0x245   :  { %2755 = vmatpush1.msk.msra.mxu0 %vm639_vm2, %v2752_v1  ;;  %2171 = vmatprep.subr.mxu1 %v2786_v53  ;;  %v1356_v37 = vpop.f32.mrf.mxu1  ;;  %v5204_v1 = vld [vmem:[#allocation14_spill] sm:$0xff] }
 0x246   :  { %v1602_v15 = vmax.f32 %v1578_v45, %v1581_v49  ;;  %v1582_v52 = vmax.f32 %v1552_v40, 0.0  ;;  %v1554_v3 = vadd.f32 %v4527_v41, %v1507_v14  ;;  %2032 = vmatprep.subr.mxu0 %v2751_v35  ;;  %v1508_v6 = vadd.f32 %v1356_v37, %v1039_v9  ;;  %2172 = vmatpush1.msra.mxu1 %v2785_v23  ;;  %v2742_v9 = vld [vmem:[%s5169_s7 + $0x460] sm:$0xff]  ;;  %v2776_v45 = vld [vmem:[%s5169_s7 + $0x558] sm:$0xff]  ;;  %v2830_v37 = vld [vmem:[%s5169_s7 + $0x708] sm:$0xff] }
 0x247   :  { %2033 = vmatpush1.msra.mxu0 %v2750_v18  ;;  %2173 = vmatprep.subr.mxu1 %v2784_v48  ;;  %v1360_v5 = vpop.f32.mrf.mxu1  ;;  %v1598_v59 = vmax.f32 %v1571_v25, %v1574_v44  ;;  %v1051_v53 = vadd.f32 %v5204_v1, %v5203_v10  ;;  %v2832_v14 = vld [vmem:[%s5169_s7 + $0x718] sm:$0xf]  ;;  %v2775_v18 = vld [vmem:[%s5169_s7 + $0x550] sm:$0xff]  ;;  %v2769_v25 = vld [vmem:[%s5169_s7 + $0x520] sm:$0xff] }
 0x248   :  { %v1603_v54 = vmax.f32 %v1579_v24, %v1582_v52  ;;  %v1584_v30 = vmax.f32 %v1554_v3, 0.0  ;;  %v1555_v0 = vadd.f32 %v4532_v46, %v1508_v6  ;;  %2034 = vmatprep.subr.mxu0 %v2749_v50  ;;  %v1510_v20 = vadd.f32 %v1360_v5, %v5202_v36  ;;  %2174 = vmatpush1.msra.mxu1 %v2783_v55  ;;  %v2831_v48 = vld [vmem:[%s5169_s7 + $0x710] sm:$0xf]  ;;  %v2774_v24 = vld [vmem:[%s5169_s7 + $0x548] sm:$0xff]  ;;  %v2773_v50 = vld [vmem:[%s5169_s7 + $0x540] sm:$0xff] }
 0x249   :  { %2035 = vmatpush1.msra.mxu0 %v2748_v21  ;;  %2175 = vmatprep.subr.mxu1 %v2782_v33  ;;  %v1362_v19 = vpop.f32.mrf.mxu1  ;;  %v1601_v35 = vmax.f32 %v1598_v59, %v1577_v17  ;;  %v2772_v3 = vld [vmem:[%s5169_s7 + $0x538] sm:$0xff]  ;;  %v2771_v21 = vld [vmem:[%s5169_s7 + $0x530] sm:$0xff]  ;;  %v2825_v5 = vld [vmem:[%s5169_s7 + $0x6e0] sm:$0xff] }
 0x24a   :  { %v4687_v29 = vmax.f32 %v1602_v15, %v1584_v30  ;;  %v1585_v43 = vmax.f32 %v1555_v0, 0.0  ;;  %v1557_v32 = vadd.f32 %v4527_v41, %v1510_v20  ;;  %2036 = vmatprep.subr.mxu0 %v2747_v13  ;;  %v1511_v28 = vadd.f32 %v1362_v19, %v1045_v22  ;;  %2176 = vmatpush1.msra.mxu1 %v2781_v39  ;;  %v2828_v6 = vld [vmem:[%s5169_s7 + $0x6f8] sm:$0xff]  ;;  %v2827_v33 = vld [vmem:[%s5169_s7 + $0x6f0] sm:$0xff]  ;;  %v2766_v0 = vld [vmem:[%s5169_s7 + $0x508] sm:$0xff] }
 0x24b   :  { %2037 = vmatpush1.msra.mxu0 %v2746_v58  ;;  %2177 = vmatprep.subr.mxu1 %v2780_v16  ;;  %v1366_v61 = vpop.f32.mrf.mxu1  ;;  %v2768_v13 = vld [vmem:[%s5169_s7 + $0x518] sm:$0xff]  ;;  %v2823_v30 = vld [vmem:[%s5169_s7 + $0x6d0] sm:$0xff]  ;;  %v2822_v36 = vld [vmem:[%s5169_s7 + $0x6c8] sm:$0xff] }
 0x24c   :  { %2038 = vmatprep.subr.mxu0 %v2745_v57  ;;  %v1513_v8 = vadd.f32 %v1366_v61, %v5205_v63  ;;  %2178 = vmatpush1.msra.mxu1 %v2779_v60  ;;  %v1606_v2 = vmax.f32 %v1603_v54, %v1585_v43  ;;  %v1558_v49 = vadd.f32 %v4532_v46, %v1511_v28  ;;  %v1587_v27 = vmax.f32 %v1557_v32, 0.0  ;;  %v2824_v39 = vld [vmem:[%s5169_s7 + $0x6d8] sm:$0xff]  ;;  %v2767_v54 = vld [vmem:[%s5169_s7 + $0x510] sm:$0xff]  ;;  %v2765_v20 = vld [vmem:[%s5169_s7 + $0x500] sm:$0xff] }
 0x24d   :  { %2039 = vmatpush1.msra.mxu0 %v2744_v26  ;;  %2179 = vmatprep.subr.mxu1 %v2778_v7  ;;  %v1368_v23 = vpop.f32.mrf.mxu1  ;;  %v2821_v58 = vld [vmem:[%s5169_s7 + $0x6c0] sm:$0xff]  ;;  %v2764_v16 = vld [vmem:[%s5169_s7 + $0x4f8] sm:$0xff]  ;;  %v2763_v17 = vld [vmem:[%s5169_s7 + $0x4f0] sm:$0xff] }
 0x24e   :  { %v1560_v40 = vadd.f32 %v4527_v41, %v1513_v8  ;;  %2040 = vmatprep.subr.mxu0 %v2743_v38  ;;  %v1514_v34 = vadd.f32 %v1368_v23, %v1051_v53  ;;  %2074 = vmatprep.mubr.f32.mxu0 %v5191_v62  ;;  %v1588_v55 = vmax.f32 %v1558_v49, 0.0  ;;  %v2867_v44 = vld [vmem:[%s5169_s7 + $0x818] sm:$0xff]  ;;  %v2866_v19 = vld [vmem:[%s5169_s7 + $0x810] sm:$0xff]  ;;  %v2762_v57 = vld [vmem:[%s5169_s7 + $0x4e8] sm:$0xff] }
 0x24f   :  { %2041 = vmatpush1.msra.mxu0 %v2742_v9  ;;  %2180 = vmatpush1.msra.mxu1 %v2777_v47  ;;  %v2865_v60 = vld [vmem:[%s5169_s7 + $0x808] sm:$0xff]  ;;  %v2761_v43 = vld [vmem:[%s5169_s7 + $0x4e0] sm:$0xff]  ;;  %v2760_v28 = vld [vmem:[%s5169_s7 + $0x4d8] sm:$0xff] }
 0x250   :  { %v1590_v41 = vmax.f32 %v1560_v40, 0.0  ;;  %v1561_v51 = vadd.f32 %v4532_v46, %v1514_v34  ;;  %2756 = vmatmul.mubr.msk.f32.vlgmr.msra.gmra.mxu0 %vm1688_vm4, %v1601_v35  ;;  %2181 = vmatprep.subr.mxu1 %v2776_v45  ;;  %v2829_v46 = vld [vmem:[%s5169_s7 + $0x700] sm:$0xff]  ;;  %v2759_v26 = vld [vmem:[%s5169_s7 + $0x4d0] sm:$0xff]  ;;  %v2758_v59 = vld [vmem:[%s5169_s7 + $0x4c8] sm:$0xff] }
 0x251   :  { %2233 = vmatprep.mubr.f32.mxu1 %v1606_v2  ;;  %2833 = vmatprep.subr.msk.mxu0 %vm639_vm2, %v2832_v14  ;;  %v2864_v32 = vld [vmem:[%s5169_s7 + $0x800] sm:$0xff]  ;;  %v2862_v7 = vld [vmem:[%s5169_s7 + $0x7f0] sm:$0xff]  ;;  %v2861_v61 = vld [vmem:[%s5169_s7 + $0x7e8] sm:$0xff] }
 0x252   :  { %v4738_v15 = vmax.f32 %v1587_v27, %v1590_v41  ;;  %v1591_v52 = vmax.f32 %v1561_v51, 0.0  ;;  %2182 = vmatpush1.msra.mxu1 %v2775_v18  ;;  %2834 = vmatpush1.msk.msra.mxu0 %vm639_vm2, %v2831_v48  ;;  %v2757_v38 = vld [vmem:[%s5169_s7 + $0x4c0] sm:$0xff]  ;;  %v2820_v1 = vld [vmem:[%s5169_s7 + $0x6b8] sm:$0xff]  ;;  %v2819_v63 = vld [vmem:[%s5169_s7 + $0x6b0] sm:$0xff] }
 0x253   :  { %2183 = vmatprep.subr.mxu1 %v2774_v24  ;;  %2262 = vmatprep.subr.mxu0 %v2830_v37  ;;  %v2860_v10 = vld [vmem:[%s5169_s7 + $0x7e0] sm:$0xff]  ;;  %v2859_v53 = vld [vmem:[%s5169_s7 + $0x7d8] sm:$0xff]  ;;  %v2858_v8 = vld [vmem:[%s5169_s7 + $0x7d0] sm:$0xff] }
 0x254   :  { %2184 = vmatpush1.msra.mxu1 %v2773_v50  ;;  %2263 = vmatpush1.msra.mxu0 %v2829_v46  ;;  %v1609_v22 = vmax.f32 %v1588_v55, %v1591_v52  ;;  %v2818_v9 = vld [vmem:[%s5169_s7 + $0x6a8] sm:$0xff]  ;;  %v2817_v2 = vld [vmem:[%s5169_s7 + $0x6a0] sm:$0xff]  ;;  %v2816_v23 = vld [vmem:[%s5169_s7 + $0x698] sm:$0xff] }
 0x255   :  { %2185 = vmatprep.subr.mxu1 %v2772_v3  ;;  %2264 = vmatprep.subr.mxu0 %v2828_v6  ;;  %v2857_v47 = vld [vmem:[%s5169_s7 + $0x7c8] sm:$0xff]  ;;  %v2856_v35 = vld [vmem:[%s5169_s7 + $0x7c0] sm:$0xff]  ;;  %v2855_v45 = vld [vmem:[%s5169_s7 + $0x7b8] sm:$0xff] }
 0x256   :  { %2186 = vmatpush1.msra.mxu1 %v2771_v21  ;;  %2265 = vmatpush1.msra.mxu0 %v2827_v33  ;;  %v2815_v49 = vld [vmem:[%s5169_s7 + $0x690] sm:$0xff]  ;;  %v2814_v34 = vld [vmem:[%s5169_s7 + $0x688] sm:$0xff]  ;;  %v2813_v18 = vld [vmem:[%s5169_s7 + $0x680] sm:$0xff] }
 0x257   :  { %2187 = vmatprep.subr.mxu1 %v2770_v4  ;;  %2266 = vmatprep.subr.mxu0 %v2826_v56  ;;  %v2854_v40 = vld [vmem:[%s5169_s7 + $0x7b0] sm:$0xff]  ;;  %v2853_v14 = vld [vmem:[%s5169_s7 + $0x7a8] sm:$0xff]  ;;  %v2852_v48 = vld [vmem:[%s5169_s7 + $0x7a0] sm:$0xff] }
 0x258   :  { %2188 = vmatpush1.msra.mxu1 %v2769_v25  ;;  %2267 = vmatpush1.msra.mxu0 %v2825_v5  ;;  %v2812_v27 = vld [vmem:[%s5169_s7 + $0x678] sm:$0xff]  ;;  %v2811_v51 = vld [vmem:[%s5169_s7 + $0x670] sm:$0xff]  ;;  %v2810_v37 = vld [vmem:[%s5169_s7 + $0x668] sm:$0xff] }
 0x259   :  { %2189 = vmatprep.subr.mxu1 %v2768_v13  ;;  %2268 = vmatprep.subr.mxu0 %v2824_v39  ;;  %v2851_v41 = vld [vmem:[%s5169_s7 + $0x798] sm:$0xff]  ;;  %v2850_v24 = vld [vmem:[%s5169_s7 + $0x790] sm:$0xff]  ;;  %v2849_v50 = vld [vmem:[%s5169_s7 + $0x788] sm:$0xff] }
 0x25a   :  { %2190 = vmatpush1.msra.mxu1 %v2767_v54  ;;  %2269 = vmatpush1.msra.mxu0 %v2823_v30  ;;  %v2809_v46 = vld [vmem:[%s5169_s7 + $0x660] sm:$0xff]  ;;  %v2808_v52 = vld [vmem:[%s5169_s7 + $0x658] sm:$0xff]  ;;  %v2807_v6 = vld [vmem:[%s5169_s7 + $0x650] sm:$0xff] }
 0x25b   :  { %2191 = vmatprep.subr.mxu1 %v2766_v0  ;;  %2270 = vmatprep.subr.mxu0 %v2822_v36  ;;  %v2848_v55 = vld [vmem:[%s5169_s7 + $0x780] sm:$0xff]  ;;  %v2847_v3 = vld [vmem:[%s5169_s7 + $0x778] sm:$0xff]  ;;  %v2846_v21 = vld [vmem:[%s5169_s7 + $0x770] sm:$0xff] }
 0x25c   :  { %2192 = vmatpush1.msra.mxu1 %v2765_v20  ;;  %2271 = vmatpush1.msra.mxu0 %v2821_v58  ;;  %v2806_v33 = vld [vmem:[%s5169_s7 + $0x648] sm:$0xff]  ;;  %v2805_v56 = vld [vmem:[%s5169_s7 + $0x640] sm:$0xff]  ;;  %v2804_v25 = vld [vmem:[%s5169_s7 + $0x638] sm:$0xff] }
 0x25d   :  { %2304 = vmatprep.mubr.f32.mxu0 %v5191_v62  ;;  %2193 = vmatprep.subr.mxu1 %v2764_v16  ;;  %v2845_v4 = vld [vmem:[%s5169_s7 + $0x768] sm:$0xff]  ;;  %v2843_v5 = vld [vmem:[%s5169_s7 + $0x758] sm:$0xff]  ;;  %v2803_v13 = vld [vmem:[%s5169_s7 + $0x630] sm:$0xff] }
 0x25e   :  { %2835 = vmatmul.mubr.msk.f32.vlgmr.msra.gmra.mxu0 %vm1688_vm4, %v4520_v42  ;;  %2399 = vmatprep.subr.mxu0 %v2867_v44  ;;  %v2863_v42 = vld [vmem:[%s5169_s7 + $0x7f8] sm:$0xff]  ;;  %v2842_v39 = vld [vmem:[%s5169_s7 + $0x750] sm:$0xff]  ;;  %v2802_v54 = vld [vmem:[%s5169_s7 + $0x628] sm:$0xff] }
 0x25f   :  { %2194 = vmatpush1.msra.mxu1 %v2763_v17  ;;  %2400 = vmatpush1.msra.mxu0 %v2866_v19  ;;  %v2841_v30 = vld [vmem:[%s5169_s7 + $0x748] sm:$0xff]  ;;  %v2801_v0 = vld [vmem:[%s5169_s7 + $0x620] sm:$0xff]  ;;  %v2800_v20 = vld [vmem:[%s5169_s7 + $0x618] sm:$0xff] }
 0x260   :  { %2463 = vmatprep.mubr.f32.mxu0 %v1609_v22  ;;  %2195 = vmatprep.subr.mxu1 %v2762_v57  ;;  %v2844_v22 = vld [vmem:[%s5169_s7 + $0x760] sm:$0xff]  ;;  %v2839_v58 = vld [vmem:[%s5169_s7 + $0x738] sm:$0xff]  ;;  %v2799_v16 = vld [vmem:[%s5169_s7 + $0x610] sm:$0xff] }
 0x261   :  { %2401 = vmatprep.subr.mxu0 %v2865_v60  ;;  %2196 = vmatpush1.msra.mxu1 %v2761_v43  ;;  %v2840_v36 = vld [vmem:[%s5169_s7 + $0x740] sm:$0xff]  ;;  %v2838_v44 = vld [vmem:[%s5169_s7 + $0x730] sm:$0xff]  ;;  %v2798_v17 = vld [vmem:[%s5169_s7 + $0x608] sm:$0xff] }
 0x262   :  { %2402 = vmatpush1.msra.mxu0 %v2864_v32  ;;  %2197 = vmatprep.subr.mxu1 %v2760_v28  ;;  %v2837_v19 = vld [vmem:[%s5169_s7 + $0x728] sm:$0xff]  ;;  %v2797_v57 = vld [vmem:[%s5169_s7 + $0x600] sm:$0xff]  ;;  %v2796_v43 = vld [vmem:[%s5169_s7 + $0x5f8] sm:$0xff] }
 0x263   :  { %2403 = vmatprep.subr.mxu0 %v2863_v42  ;;  %2198 = vmatpush1.msra.mxu1 %v2759_v26  ;;  %v2836_v60 = vld [vmem:[%s5169_s7 + $0x720] sm:$0xff]  ;;  %v2899_v32 = vld [vmem:[%s5169_s7 + $0x918] sm:$0xff]  ;;  %v2795_v28 = vld [vmem:[%s5169_s7 + $0x5f0] sm:$0xff] }
 0x264   :  { %2404 = vmatpush1.msra.mxu0 %v2862_v7  ;;  %2199 = vmatprep.subr.mxu1 %v2758_v59  ;;  %v2898_v42 = vld [vmem:[%s5169_s7 + $0x910] sm:$0xff]  ;;  %v2794_v26 = vld [vmem:[%s5169_s7 + $0x5e8] sm:$0xff]  ;;  %v2793_v59 = vld [vmem:[%s5169_s7 + $0x5e0] sm:$0xff] }
 0x265   :  { %2405 = vmatprep.subr.mxu0 %v2861_v61  ;;  %2200 = vmatpush1.msra.mxu1 %v2757_v38  ;;  %v2897_v7 = vld [vmem:[%s5169_s7 + $0x908] sm:$0xff]  ;;  %v2896_v61 = vld [vmem:[%s5169_s7 + $0x900] sm:$0xff]  ;;  %v2792_v38 = vld [vmem:[%s5169_s7 + $0x5d8] sm:$0xff] }
 0x266   :  { %2406 = vmatpush1.msra.mxu0 %v2860_v10  ;;  %2201 = vmatprep.subr.mxu1 %v2820_v1  ;;  %v2895_v10 = vld [vmem:[%s5169_s7 + $0x8f8] sm:$0xff]  ;;  %v2791_v1 = vld [vmem:[%s5169_s7 + $0x5d0] sm:$0xff] }
 0x267   :  { %2407 = vmatprep.subr.mxu0 %v2859_v53  ;;  %2202 = vmatpush2.msra.mxu1 %v2819_v63  ;;  %v2894_v53 = vld [vmem:[%s5169_s7 + $0x8f0] sm:$0xff]  ;;  %v2790_v63 = vld [vmem:[%s5169_s7 + $0x5c8] sm:$0xff] }
 0x268   :  { %2408 = vmatpush1.msra.mxu0 %v2858_v8  ;;  %2203 = vmatprep.subr.mxu1 %v2818_v9  ;;  %v2893_v8 = vld [vmem:[%s5169_s7 + $0x8e8] sm:$0xff]  ;;  %v2789_v9 = vld [vmem:[%s5169_s7 + $0x5c0] sm:$0xff] }
 0x269   :  { %2409 = vmatprep.subr.mxu0 %v2857_v47  ;;  %2204 = vmatpush2.msra.mxu1 %v2817_v2  ;;  %v2892_v47 = vld [vmem:[%s5169_s7 + $0x8e0] sm:$0xff]  ;;  %v2891_v2 = vld [vmem:[%s5169_s7 + $0x8d8] sm:$0xff] }
 0x26a   :  { %2410 = vmatpush1.msra.mxu0 %v2856_v35  ;;  %2205 = vmatprep.subr.mxu1 %v2816_v23  ;;  %v2911_v35 = vld [vmem:[%s5169_s7 + $0x978] sm:$0xf]  ;;  %v2890_v23 = vld [vmem:[%s5169_s7 + $0x8d0] sm:$0xff] }
 0x26b   :  { %2411 = vmatprep.subr.mxu0 %v2855_v45  ;;  %2206 = vmatpush2.msra.mxu1 %v2815_v49  ;;  %v2910_v45 = vld [vmem:[%s5169_s7 + $0x970] sm:$0xf]  ;;  %v2889_v49 = vld [vmem:[%s5169_s7 + $0x8c8] sm:$0xff] }
 0x26c   :  { %2412 = vmatpush1.msra.mxu0 %v2854_v40  ;;  %2207 = vmatprep.subr.mxu1 %v2814_v34  ;;  %v2909_v40 = vld [vmem:[%s5169_s7 + $0x968] sm:$0xff]  ;;  %v2888_v34 = vld [vmem:[%s5169_s7 + $0x8c0] sm:$0xff] }
 0x26d   :  { %2413 = vmatprep.subr.mxu0 %v2853_v14  ;;  %2208 = vmatpush2.msra.mxu1 %v2813_v18  ;;  %v2908_v14 = vld [vmem:[%s5169_s7 + $0x960] sm:$0xff]  ;;  %v2907_v18 = vld [vmem:[%s5169_s7 + $0x958] sm:$0xff] }
 0x26e   :  { %2414 = vmatpush1.msra.mxu0 %v2852_v48  ;;  %2209 = vmatprep.subr.mxu1 %v2812_v27  ;;  %v2886_v48 = vld [vmem:[%s5169_s7 + $0x8b0] sm:$0xff] }
 0x26f   :  { %2415 = vmatprep.subr.mxu0 %v2851_v41  ;;  %2210 = vmatpush2.msra.mxu1 %v2811_v51  ;;  %v2906_v27 = vld [vmem:[%s5169_s7 + $0x950] sm:$0xff]  ;;  %v2885_v41 = vld [vmem:[%s5169_s7 + $0x8a8] sm:$0xff] }
 0x270   :  { %2416 = vmatpush1.msra.mxu0 %v2850_v24  ;;  %2211 = vmatprep.subr.mxu1 %v2810_v37  ;;  %v2905_v51 = vld [vmem:[%s5169_s7 + $0x948] sm:$0xff]  ;;  %v2884_v24 = vld [vmem:[%s5169_s7 + $0x8a0] sm:$0xff] }
 0x271   :  { %2417 = vmatprep.subr.mxu0 %v2849_v50  ;;  %2212 = vmatpush2.msra.mxu1 %v2809_v46  ;;  %v2904_v37 = vld [vmem:[%s5169_s7 + $0x940] sm:$0xff]  ;;  %v2883_v50 = vld [vmem:[%s5169_s7 + $0x898] sm:$0xff] }
 0x272   :  { %2418 = vmatpush1.msra.mxu0 %v2848_v55  ;;  %2213 = vmatprep.subr.mxu1 %v2808_v52  ;;  %v2903_v46 = vld [vmem:[%s5169_s7 + $0x938] sm:$0xff]  ;;  %v2882_v55 = vld [vmem:[%s5169_s7 + $0x890] sm:$0xff] }
 0x273   :  { %2419 = vmatprep.subr.mxu0 %v2847_v3  ;;  %2214 = vmatpush2.msra.mxu1 %v2807_v6  ;;  %v2902_v52 = vld [vmem:[%s5169_s7 + $0x930] sm:$0xff]  ;;  %v2881_v3 = vld [vmem:[%s5169_s7 + $0x888] sm:$0xff] }
 0x274   :  { %2420 = vmatpush1.msra.mxu0 %v2846_v21  ;;  %2215 = vmatprep.subr.mxu1 %v2806_v33  ;;  %v2901_v6 = vld [vmem:[%s5169_s7 + $0x928] sm:$0xff]  ;;  %v2880_v21 = vld [vmem:[%s5169_s7 + $0x880] sm:$0xff] }
 0x275   :  { %2421 = vmatprep.subr.mxu0 %v2845_v4  ;;  %2216 = vmatpush2.msra.mxu1 %v2805_v56  ;;  %v2900_v33 = vld [vmem:[%s5169_s7 + $0x920] sm:$0xff]  ;;  %v2879_v4 = vld [vmem:[%s5169_s7 + $0x878] sm:$0xff]  ;;  %v2878_v56 = vld [vmem:[%s5169_s7 + $0x870] sm:$0xff] }
 0x276   :  { %2422 = vmatpush1.msra.mxu0 %v2844_v22  ;;  %2217 = vmatprep.subr.mxu1 %v2804_v25  ;;  %v2877_v22 = vld [vmem:[%s5169_s7 + $0x868] sm:$0xff]  ;;  %v2876_v25 = vld [vmem:[%s5169_s7 + $0x860] sm:$0xff] }
 0x277   :  { %2423 = vmatprep.subr.mxu0 %v2843_v5  ;;  %2218 = vmatpush2.msra.mxu1 %v2803_v13  ;;  %v2875_v5 = vld [vmem:[%s5169_s7 + $0x858] sm:$0xff]  ;;  %v2874_v13 = vld [vmem:[%s5169_s7 + $0x850] sm:$0xff] }
 0x278   :  { %2424 = vmatpush1.msra.mxu0 %v2842_v39  ;;  %2219 = vmatprep.subr.mxu1 %v2802_v54  ;;  %v2871_v39 = vld [vmem:[%s5169_s7 + $0x838] sm:$0xff]  ;;  %v2870_v54 = vld [vmem:[%s5169_s7 + $0x830] sm:$0xff] }
 0x279   :  { %2425 = vmatprep.subr.mxu0 %v2841_v30  ;;  %2220 = vmatpush2.msra.mxu1 %v2801_v0  ;;  %v2869_v30 = vld [vmem:[%s5169_s7 + $0x828] sm:$0xff]  ;;  %v2868_v0 = vld [vmem:[%s5169_s7 + $0x820] sm:$0xff] }
 0x27a   :  { %2426 = vmatpush1.msra.mxu0 %v2840_v36  ;;  %2221 = vmatprep.subr.mxu1 %v2800_v20  ;;  %v16_v36 = vstv %s5171_s10 }
 0x27b   :  { %2427 = vmatprep.subr.mxu0 %v2839_v58  ;;  %2222 = vmatpush2.msra.mxu1 %v2799_v16  ;;  %17 = vst [vmem:[#allocation2] sm:$0x1] %v16_v36 }
 0x27c   :  { %2428 = vmatpush1.msra.mxu0 %v2838_v44  ;;  %2223 = vmatprep.subr.mxu1 %v2798_v17 }
 0x27d   :  { %2429 = vmatprep.subr.mxu0 %v2837_v19  ;;  %2224 = vmatpush2.msra.mxu1 %v2797_v57  ;;  %v1611_v57 = vld [vmem:[%s5172_s8] sm:$0x3] }
 0x27e   :  { %2430 = vmatpush1.msra.mxu0 %v2836_v60  ;;  %2225 = vmatprep.subr.mxu1 %v2796_v43 }
 0x27f   :  { %2431 = vmatprep.subr.mxu0 %v2899_v32  ;;  %2226 = vmatpush2.msra.mxu1 %v2795_v28 }
 0x280   :  { %2432 = vmatpush2.msra.mxu0 %v2898_v42  ;;  %2227 = vmatprep.subr.mxu1 %v2794_v26 }
 0x281   :  { %2433 = vmatprep.subr.mxu0 %v2897_v7  ;;  %2228 = vmatpush2.msra.mxu1 %v2793_v59  ;;  %v1848_v7 = vrot.slane %v1611_v57, %v4516_v12 }
 0x282   :  { %2434 = vmatpush2.msra.mxu0 %v2896_v61  ;;  %2229 = vmatprep.subr.mxu1 %v2792_v38 }
 0x283   :  { %2435 = vmatprep.subr.mxu0 %v2895_v10  ;;  %2230 = vmatpush2.msra.mxu1 %v2791_v1 }
 0x284   :  { %2436 = vmatpush2.msra.mxu0 %v2894_v53  ;;  %2231 = vmatprep.subr.mxu1 %v2790_v63 }
 0x285   :  { %2437 = vmatprep.subr.mxu0 %v2893_v8  ;;  %2232 = vmatpush2.msra.mxu1 %v2789_v9 }
 0x286   :  { %2438 = vmatpush2.msra.mxu0 %v2892_v47  ;;  %2234 = vmatmul.mubr.f32.vlgmr.msra.gmra.mxu1 %v4687_v29  ;;  %v2887_v29 = vld [vmem:[%s5169_s7 + $0x8b8] sm:$0xff] }
 0x287   :  { %2439 = vmatprep.subr.mxu0 %v2891_v2  ;;  %2912 = vmatprep.subr.msk.mxu1 %vm639_vm2, %v2911_v35 }
 0x288   :  { %2440 = vmatpush2.msra.mxu0 %v2890_v23  ;;  %2913 = vmatpush1.msk.msra.mxu1 %vm639_vm2, %v2910_v45 }
 0x289   :  { %2441 = vmatprep.subr.mxu0 %v2889_v49  ;;  %2492 = vmatprep.subr.mxu1 %v2909_v40 }
 0x28a   :  { %2442 = vmatpush2.msra.mxu0 %v2888_v34  ;;  %2493 = vmatpush1.msra.mxu1 %v2908_v14 }
 0x28b   :  { %2443 = vmatprep.subr.mxu0 %v2887_v29  ;;  %2494 = vmatprep.subr.mxu1 %v2907_v18  ;;  %v2545_v18 = vld [vmem:[%s5173_s9] sm:$0x3] }
 0x28c   :  { %2444 = vmatpush2.msra.mxu0 %v2886_v48  ;;  %2495 = vmatpush1.msra.mxu1 %v2906_v27  ;;  %v2554_v27 = vrot.slane %v2545_v18, %v4516_v12 }
 0x28d   :  { %2445 = vmatprep.subr.mxu0 %v2885_v41  ;;  %2496 = vmatprep.subr.mxu1 %v2905_v51  ;;  %v2550_v51 = vrot.slane %v2545_v18, %v4514_v31 }
 0x28e   :  { %2446 = vmatpush2.msra.mxu0 %v2884_v24  ;;  %2497 = vmatpush1.msra.mxu1 %v2904_v37 }
 0x28f   :  { %2447 = vmatprep.subr.mxu0 %v2883_v50  ;;  %2498 = vmatprep.subr.mxu1 %v2903_v46 }
 0x290   :  { %2448 = vmatpush2.msra.mxu0 %v2882_v55  ;;  %2499 = vmatpush1.msra.mxu1 %v2902_v52  ;;  %v2915_v52 = vld [vmem:[#allocation2] ss:$0 sm:$0xff] }
 0x291   :  { %2449 = vmatprep.subr.mxu0 %v2881_v3  ;;  %2500 = vmatprep.subr.mxu1 %v2901_v6 }
 0x292   :  { %2450 = vmatpush2.msra.mxu0 %v2880_v21  ;;  %2501 = vmatpush1.msra.mxu1 %v2900_v33 }
 0x293   :  { %2534 = vmatprep.mubr.f32.mxu1 %v5191_v62  ;;  %2451 = vmatprep.subr.mxu0 %v2879_v4  ;;  %v2873_v62 = vld [vmem:[%s5169_s7 + $0x848] sm:$0xff] }
 0x294   :  { %2914 = vmatmul.mubr.msk.f32.vlgmr.msra.gmra.mxu1 %vm1688_vm4, %v4524_v11  ;;  %2452 = vmatpush2.msra.mxu0 %v2878_v56  ;;  %v2872_v11 = vld [vmem:[%s5169_s7 + $0x840] sm:$0xff] }
 0x295   :  { %2453 = vmatprep.subr.mxu0 %v2877_v22 }
 0x296   :  { %2454 = vmatpush2.msra.mxu0 %v2876_v25 }
 0x297   :  { %2455 = vmatprep.subr.mxu0 %v2875_v5 }
 0x298   :  { %2456 = vmatpush2.msra.mxu0 %v2874_v13 }
 0x299   :  { %2457 = vmatprep.subr.mxu0 %v2873_v62 }
 0x29a   :  { %2458 = vmatpush2.msra.mxu0 %v2872_v11 }
 0x29b   :  { %2459 = vmatprep.subr.mxu0 %v2871_v39 }
 0x29c   :  { %2460 = vmatpush2.msra.mxu0 %v2870_v54 }
 0x29d   :  { %2461 = vmatprep.subr.mxu0 %v2869_v30 }
 0x29e   :  { %2462 = vmatpush2.msra.mxu0 %v2868_v0 }
 0x29f   :  { %2464 = vmatmul.mubr.f32.vlgmr.msra.gmra.mxu0 %v4738_v15  ;;  %v1844_v15 = vrot.slane %v1611_v57, %v4514_v31 }
 0x2f7   :  { %v1764_v20 = vpop.f32.mrf.mxu1 }
 0x2f9   :  { %v1766_v16 = vpop.f32.mrf.mxu1 }
 0x303   :  { %v1835_v44 = vpop.f32.mrf.mxu1 }
 0x304   :  { %v2005_v58 = vpop.f32.mrf.mxu0  ;;  %v1836_v28 = vadd.f32 %v1835_v44, %v1764_v20 }
 0x305   :  { %v1837_v60 = vpop.f32.mrf.mxu1 }
 0x306   :  { %v2007_v17 = vpop.f32.mrf.mxu0  ;;  %v1838_v26 = vadd.f32 %v1837_v60, %v1766_v16  ;;  %v1851_v38 = vadd.f32 %v1844_v15, %v1836_v28 }
 0x308   :  { %v1852_v8 = vadd.f32 %v1848_v7, %v1838_v26 }
 0x310   :  { %v2076_v19 = vpop.f32.mrf.mxu0 }
 0x311   :  { %v2077_v59 = vadd.f32 %v2076_v19, %v2005_v58 }
 0x312   :  { %v2078_v43 = vpop.f32.mrf.mxu0 }
 0x313   :  { %v2079_v10 = vadd.f32 %v2078_v43, %v2007_v17  ;;  %v2081_v9 = vadd.f32 %v2077_v59, %v1851_v38 }
 0x315   :  { %v2082_v35 = vadd.f32 %v2079_v10, %v1852_v8 }
 0x31e   :  { %v2306_v42 = vpop.f32.mrf.mxu0 }
 0x320   :  { %v2308_v53 = vpop.f32.mrf.mxu0 }
 0x346   :  { %v2235_v32 = vpop.f32.mrf.mxu1 }
 0x347   :  { %v2307_v1 = vadd.f32 %v2306_v42, %v2235_v32 }
 0x348   :  { %v2237_v61 = vpop.f32.mrf.mxu1 }
 0x349   :  { %v2309_v47 = vadd.f32 %v2308_v53, %v2237_v61  ;;  %v2311_v23 = vadd.f32 %v2307_v1, %v2081_v9 }
 0x34b   :  { %v2312_v34 = vadd.f32 %v2309_v47, %v2082_v35 }
 0x354   :  { %v2536_v63 = vpop.f32.mrf.mxu1 }
 0x356   :  { %v2538_v49 = vpop.f32.mrf.mxu1 }
 0x35f   :  { %v2465_v2 = vpop.f32.mrf.mxu0 }
 0x360   :  { %v2537_v45 = vadd.f32 %v2536_v63, %v2465_v2 }
 0x361   :  { %v2467_v40 = vpop.f32.mrf.mxu0 }
 0x362   :  { %v2541_v14 = vadd.f32 %v2537_v45, %v2311_v23  ;;  %v2539_v29 = vadd.f32 %v2538_v49, %v2467_v40 }
 0x364   :  { %v2542_v48 = vadd.f32 %v2539_v29, %v2312_v34  ;;  %v2543_v41 = vmax.f32 %v2541_v14, 0.0 }
 0x366   :  { %v2544_v24 = vmax.f32 %v2542_v48, 0.0  ;;  %v2557_v50 = vmul.f32 %v2550_v51, %v2543_v41 }
 0x368   :  { %v2558_v37 = vmul.f32 %v2554_v27, %v2544_v24 }
 0x36a   :  { %v2560_v46 = vsel %vm2559_vm5, %v2558_v37, 0.0 }
 0x36b   :  { %v2561_v55 = vadd.f32 %v2560_v46, %v2557_v50 }
 0x36d   :  { %2562 = vadd.xlane.f32.xlu0 %v2561_v55 }
 0x3f6   :  { %v2563_v3 = vpop.xlane.xlu0 %2562 }
 0x3f7   :  { %v2571_v6 = vadd.f32 %v2915_v52, %v2563_v3 }
 0x3f9   :  { %2573 = vst.msk [vmem:[%s5174_s11] sm:$0xff] %vm2572_vm6, %v2571_v6 }

</bundles_post_ra>
